<compile_context>
chip_gen: v7x
topology: tpu7x:2x2x1
jax: 0.10.0
libtpu: 0.0.40
codegen_flags: <defaults>
</compile_context>

<pallas_src>
import functools
import math

import jax
import jax.numpy as jnp
from jax.experimental import pallas as pl
from jax.experimental.pallas import tpu as pltpu


def _round_up(x, m):
    return ((x + m - 1) // m) * m


# Default tiles fit comfortably in VMEM on every generation (incl. v7x 64 MiB):
#   A tile 256x512 bf16 = 256 KiB, x tile 512x128 f32 = 256 KiB, (256,128) f32
#   accumulator = 128 KiB  ->  ~2 MiB total with double buffering.
# Per-generation tuning: v7x ~ (512, 512); v5e/v6e can afford (1024, 1024) to
# amortize per-grid-step overhead (raise vmem_limit_bytes if needed).
_TM_DEFAULT = 256
_TK_DEFAULT = 512


# ----------------------------------------------------------------------------
# Kernel 1: fused LightGCN propagation step (the LightGCNAgg hot path).
#   x_new   = A @ x                         (bf16 MXU matmul, f32 accumulate)
#   acc_new = (acc + x_new) * out_scale     (hop-mean fused into the epilogue)
# ----------------------------------------------------------------------------
def _agg_fused_kernel(acc_ref, a_ref, x_ref, xnew_ref, accnew_ref, mm_ref, *,
                      out_scale):
    k = pl.program_id(1)

    @pl.when(k == 0)
    def _():
        mm_ref[...] = jnp.zeros_like(mm_ref)

    mm_ref[...] += jnp.dot(
        a_ref[...],                            # bf16 [TM, TK]
        x_ref[...].astype(jnp.bfloat16),       # bf16 [TK, Dpad]
        preferred_element_type=jnp.float32,
    )

    @pl.when(k == pl.num_programs(1) - 1)
    def _():
        mm = mm_ref[...]
        xnew_ref[...] = mm
        acc_new = acc_ref[...] + mm
        if out_scale != 1.0:                   # static python value (trace time)
            acc_new = acc_new * jnp.float32(out_scale)
        accnew_ref[...] = acc_new


def lightgcn_agg_step(a_bf16, x, acc, *, tm, tk, out_scale, alias_acc):
    """One propagation hop on padded arrays. Returns (x_new, acc_new)."""
    n_pad, d_pad = x.shape
    grid = (n_pad // tm, n_pad // tk)          # reduction axis last
    kernel = functools.partial(_agg_fused_kernel, out_scale=out_scale)
    return pl.pallas_call(
        kernel,
        out_shape=(
            jax.ShapeDtypeStruct((n_pad, d_pad), jnp.float32),   # x_new
            jax.ShapeDtypeStruct((n_pad, d_pad), jnp.float32),   # acc_new
        ),
        grid_spec=pltpu.PrefetchScalarGridSpec(
            num_scalar_prefetch=0,
            grid=grid,
            in_specs=[
                pl.BlockSpec((tm, d_pad), lambda i, k: (i, 0)),   # acc
                pl.BlockSpec((tm, tk), lambda i, k: (i, k)),      # A (bf16)
                pl.BlockSpec((tk, d_pad), lambda i, k: (k, 0)),   # x
            ],
            out_specs=[
                pl.BlockSpec((tm, d_pad), lambda i, k: (i, 0)),   # x_new
                pl.BlockSpec((tm, d_pad), lambda i, k: (i, 0)),   # acc_new
            ],
            scratch_shapes=[pltpu.VMEM((tm, d_pad), jnp.float32)],
        ),
        compiler_params=pltpu.CompilerParams(
            dimension_semantics=("parallel", "arbitrary"),
        ),
        # Reuse the running-accumulator HBM buffer in place, but only when it
        # is a distinct buffer from x (hops >= 1); on hop 0 acc is x itself.
        input_output_aliases={0: 1} if alias_acc else {},
    )(acc, a_bf16, x)


# ----------------------------------------------------------------------------
# Kernel 2: BPR loss, tiled over the batch, scalar emitted through SMEM.
#   pos = sum(u * i, -1); neg = sum(u * n, -1); loss = mean(softplus(neg - pos))
# ----------------------------------------------------------------------------
def _bpr_loss_kernel(u_ref, i_ref, n_ref, o_ref, acc_ref, *, inv_batch):
    b = pl.program_id(0)

    @pl.when(b == 0)
    def _():
        acc_ref[...] = jnp.zeros_like(acc_ref)

    u = u_ref[...]                                            # [TB, Dpad]
    pos = jnp.sum(u * i_ref[...], axis=-1, keepdims=True)     # [TB, 1]
    neg = jnp.sum(u * n_ref[...], axis=-1, keepdims=True)     # [TB, 1]
    # softplus(x) = log(1 + exp(x)), computed stably as logaddexp(0, x)
    sp = jnp.logaddexp(jnp.float32(0.0), neg - pos)           # [TB, 1]
    acc_ref[...] = acc_ref[...] + jnp.sum(sp)

    @pl.when(b == pl.num_programs(0) - 1)
    def _():
        o_ref[0] = acc_ref[0, 0] * jnp.float32(inv_batch)


def bpr_loss(users_emb, items_emb, neg_item_embs, *, tb=512):
    batch, d_pad = users_emb.shape
    if batch % tb != 0:
        tb = batch                              # small batch: single block
    kernel = functools.partial(_bpr_loss_kernel, inv_batch=1.0 / batch)
    out = pl.pallas_call(
        kernel,
        out_shape=jax.ShapeDtypeStruct((1,), jnp.float32),
        grid_spec=pltpu.PrefetchScalarGridSpec(
            num_scalar_prefetch=0,
            grid=(batch // tb,),
            in_specs=[
                pl.BlockSpec((tb, d_pad), lambda b: (b, 0)),
                pl.BlockSpec((tb, d_pad), lambda b: (b, 0)),
                pl.BlockSpec((tb, d_pad), lambda b: (b, 0)),
            ],
            out_specs=pl.BlockSpec(memory_space=pltpu.MemorySpace.SMEM),
            scratch_shapes=[pltpu.VMEM((1, 1), jnp.float32)],
        ),
        compiler_params=pltpu.CompilerParams(
            dimension_semantics=("arbitrary",),
        ),
    )(users_emb, items_emb, neg_item_embs)
    return out[0]


# ----------------------------------------------------------------------------
# LightGCN module glue (plain JAX: padding / concat / hop loop / gathers).
# ----------------------------------------------------------------------------
def lightgcn_computer(user_emb, item_emb, g_laplace, *, hop, tm=_TM_DEFAULT,
                      tk=_TK_DEFAULT):
    num_users, dim = user_emb.shape
    num_items = item_emb.shape[0]
    n = num_users + num_items

    d_pad = _round_up(dim, 128)                               # lane-dense
    n_pad = _round_up(n, (tm * tk) // math.gcd(tm, tk))       # fits the grid

    all_emb = jnp.concatenate([user_emb, item_emb], axis=0)   # [N, D]
    x = jnp.zeros((n_pad, d_pad), jnp.float32).at[:n, :dim].set(all_emb)
    a_bf16 = (
        jnp.zeros((n_pad, n_pad), jnp.bfloat16)
        .at[:n, :n].set(g_laplace.astype(jnp.bfloat16))
    )

    acc = x                                   # layer-0 term of the hop mean
    inv_hops = 1.0 / float(hop + 1)
    for layer in range(hop):
        x, acc = lightgcn_agg_step(
            a_bf16, x, acc,
            tm=tm, tk=tk,
            out_scale=inv_hops if layer == hop - 1 else 1.0,
            alias_acc=(layer > 0),
        )
    light_out = acc                           # already scaled by 1/(hop+1)

    # Rows are exact; the extra zero columns beyond `dim` are kept so the loss
    # kernel sees a 128-lane-dense layout (zero columns contribute nothing).
    return light_out[:num_users], light_out[num_users:n]


def lightgcn_forward(user_emb, item_emb, g_laplace, users, items, negatives, *,
                     hop, tm=_TM_DEFAULT, tk=_TK_DEFAULT):
    all_users_emb, all_items_emb = lightgcn_computer(
        user_emb, item_emb, g_laplace, hop=hop, tm=tm, tk=tk)
    users_emb = all_users_emb[users]                          # [B, Dpad]
    items_emb = all_items_emb[items]                          # [B, Dpad]
    neg_item_embs = all_items_emb[negatives]                  # [B, K, Dpad], K=1
    # pos_exp = exp(pos_scores) in the reference is dead code (unused) — skipped.
    # Reference .squeeze() semantics assume a single negative per positive (K=1).
    neg_flat = jnp.squeeze(neg_item_embs, axis=1)
    return bpr_loss(users_emb, items_emb, neg_flat)


# ----------------------------------------------------------------------------
# Deterministic parameter / input construction.
# ----------------------------------------------------------------------------
def xavier_normal(key, shape):
    fan_in, fan_out = shape[0], shape[1]
    std = (2.0 / (fan_in + fan_out)) ** 0.5
    return std * jax.random.normal(key, shape, dtype=jnp.float32)


def make_laplacian(key, num_users, num_items):
    # Symmetric normalized adjacency of a random bipartite user-item graph.
    r = (jax.random.uniform(key, (num_users, num_items)) < 0.3).astype(jnp.float32)
    n = num_users + num_items
    A = jnp.zeros((n, n), dtype=jnp.float32)
    A = A.at[:num_users, num_users:].set(r)
    A = A.at[num_users:, :num_users].set(r.T)
    deg = jnp.sum(A, axis=1)
    d_inv_sqrt = jnp.where(deg > 0, 1.0 / jnp.sqrt(jnp.maximum(deg, 1e-12)), 0.0)
    return A * d_inv_sqrt[:, None] * d_inv_sqrt[None, :]


if __name__ == "__main__":
    num_users, num_items, dim, hop = 12, 20, 32, 2
    batch = 8
    key = jax.random.PRNGKey(0)
    k_u, k_i, k_a, k_bu, k_bi, k_bn = jax.random.split(key, 6)

    user_emb = xavier_normal(k_u, (num_users, dim))           # User_Emb.weight
    item_emb = xavier_normal(k_i, (num_items, dim))           # Item_Emb.weight
    g_laplace = make_laplacian(k_a, num_users, num_items)     # dense [N, N]

    users = jax.random.randint(k_bu, (batch,), 0, num_users)
    items = jax.random.randint(k_bi, (batch,), 0, num_items)
    negatives = jax.random.randint(k_bn, (batch, 1), 0, num_items)  # K = 1

    fwd = jax.jit(functools.partial(lightgcn_forward, hop=hop))
    loss = fwd(user_emb, item_emb, g_laplace, users, items, negatives)
    jax.block_until_ready(loss)
    assert loss.shape == () and jnp.isfinite(loss)
    print("KERNEL_OK")
</pallas_src>

<mosaic_0001>
module attributes {stable_mosaic.version = 11 : i64} {
  func.func @_agg_fused_kernel(%arg0: i32, %arg1: i32, %arg2: memref<256x128xf32, #tpu.memory_space<vmem>>, %arg3: memref<256x512xbf16, #tpu.memory_space<vmem>>, %arg4: memref<512x128xf32, #tpu.memory_space<vmem>>, %arg5: memref<256x128xf32, #tpu.memory_space<vmem>>, %arg6: memref<256x128xf32, #tpu.memory_space<vmem>>, %arg7: memref<256x128xf32, #tpu.memory_space<vmem>>) attributes {dimension_semantics = [#tpu.dimension_semantics<parallel>, #tpu.dimension_semantics<arbitrary>], iteration_bounds = array<i64: 2, 1>, scalar_prefetch = 0 : i64, scratch_operands = 1 : i64, tpu.core_type = #tpu.core_type<tc>, window_params = [{transform_indices = @transform_0, window_bounds = array<i64: 256, 128>}, {transform_indices = @transform_1, window_bounds = array<i64: 256, 512>}, {transform_indices = @transform_2, window_bounds = array<i64: 512, 128>}, {transform_indices = @transform_3, window_bounds = array<i64: 256, 128>}, {transform_indices = @transform_4, window_bounds = array<i64: 256, 128>}]} {
    %c0_i32 = arith.constant 0 : i32
    %0 = arith.cmpi eq, %arg1, %c0_i32 : i32
    %1 = arith.extui %0 : i1 to i32
    %c0_i32_0 = arith.constant 0 : i32
    %2 = arith.cmpi ne, %1, %c0_i32_0 : i32
    scf.if %2 {
      %cst_10 = arith.constant 0.000000e+00 : f32
      %13 = vector.broadcast %cst_10 : f32 to vector<256x128xf32>
      %c0_11 = arith.constant 0 : index
      %c0_12 = arith.constant 0 : index
      %14 = vector.load %arg7[%c0_11, %c0_12] : memref<256x128xf32, #tpu.memory_space<vmem>>, vector<256x128xf32>
      tpu.vector_store %arg7[%c0_11, %c0_12], %13 {strides = array<i32>} : memref<256x128xf32, #tpu.memory_space<vmem>>, vector<256x128xf32>,
    } else {
    }
    %c0 = arith.constant 0 : index
    %c0_1 = arith.constant 0 : index
    %3 = vector.load %arg7[%c0, %c0_1] : memref<256x128xf32, #tpu.memory_space<vmem>>, vector<256x128xf32>
    %c0_2 = arith.constant 0 : index
    %c0_3 = arith.constant 0 : index
    %4 = vector.load %arg3[%c0_2, %c0_3] : memref<256x512xbf16, #tpu.memory_space<vmem>>, vector<256x512xbf16>
    %c0_4 = arith.constant 0 : index
    %c0_5 = arith.constant 0 : index
    %5 = vector.load %arg4[%c0_4, %c0_5] : memref<512x128xf32, #tpu.memory_space<vmem>>, vector<512x128xf32>
    %6 = arith.truncf %5 : vector<512x128xf32> to vector<512x128xbf16>
    %cst = arith.constant dense<0.000000e+00> : vector<256x128xf32>
    %7 = tpu.matmul %4, %6, %cst {dimension_numbers = #tpu.dot_dimension_numbers<[1], [0], [0], [1], [0, 0, 1, 1], [], []>} : vector<256x512xbf16>, vector<512x128xbf16>, vector<256x128xf32> -> vector<256x128xf32>
    %8 = arith.addf %3, %7 : vector<256x128xf32>
    %c0_6 = arith.constant 0 : index
    %c0_7 = arith.constant 0 : index
    %9 = vector.load %arg7[%c0_6, %c0_7] : memref<256x128xf32, #tpu.memory_space<vmem>>, vector<256x128xf32>
    tpu.vector_store %arg7[%c0_6, %c0_7], %8 {strides = array<i32>} : memref<256x128xf32, #tpu.memory_space<vmem>>, vector<256x128xf32>,
    %c0_i32_8 = arith.constant 0 : i32
    %10 = arith.cmpi eq, %arg1, %c0_i32_8 : i32
    %11 = arith.extui %10 : i1 to i32
    %c0_i32_9 = arith.constant 0 : i32
    %12 = arith.cmpi ne, %11, %c0_i32_9 : i32
    scf.if %12 {
      %c0_10 = arith.constant 0 : index
      %c0_11 = arith.constant 0 : index
      %13 = vector.load %arg7[%c0_10, %c0_11] : memref<256x128xf32, #tpu.memory_space<vmem>>, vector<256x128xf32>
      %c0_12 = arith.constant 0 : index
      %c0_13 = arith.constant 0 : index
      %14 = vector.load %arg5[%c0_12, %c0_13] : memref<256x128xf32, #tpu.memory_space<vmem>>, vector<256x128xf32>
      tpu.vector_store %arg5[%c0_12, %c0_13], %13 {strides = array<i32>} : memref<256x128xf32, #tpu.memory_space<vmem>>, vector<256x128xf32>,
      %c0_14 = arith.constant 0 : index
      %c0_15 = arith.constant 0 : index
      %15 = vector.load %arg2[%c0_14, %c0_15] : memref<256x128xf32, #tpu.memory_space<vmem>>, vector<256x128xf32>
      %16 = arith.addf %15, %13 : vector<256x128xf32>
      %c0_16 = arith.constant 0 : index
      %c0_17 = arith.constant 0 : index
      %17 = vector.load %arg6[%c0_16, %c0_17] : memref<256x128xf32, #tpu.memory_space<vmem>>, vector<256x128xf32>
      tpu.vector_store %arg6[%c0_16, %c0_17], %16 {strides = array<i32>} : memref<256x128xf32, #tpu.memory_space<vmem>>, vector<256x128xf32>,
    } else {
    }
    return
  }
  func.func @transform_0(%arg0: i32, %arg1: i32) -> (i32, i32) {
    %c0_i32 = arith.constant 0 : i32
    %c0_i32_0 = arith.constant 0 : i32
    return %arg0, %c0_i32 : i32, i32
  }
  func.func @transform_1(%arg0: i32, %arg1: i32) -> (i32, i32) {
    %c0_i32 = arith.constant 0 : i32
    return %arg0, %arg1 : i32, i32
  }
  func.func @transform_2(%arg0: i32, %arg1: i32) -> (i32, i32) {
    %c0_i32 = arith.constant 0 : i32
    %c0_i32_0 = arith.constant 0 : i32
    return %arg1, %c0_i32 : i32, i32
  }
  func.func @transform_3(%arg0: i32, %arg1: i32) -> (i32, i32) {
    %c0_i32 = arith.constant 0 : i32
    %c0_i32_0 = arith.constant 0 : i32
    return %arg0, %c0_i32 : i32, i32
  }
  func.func @transform_4(%arg0: i32, %arg1: i32) -> (i32, i32) {
    %c0_i32 = arith.constant 0 : i32
    %c0_i32_0 = arith.constant 0 : i32
    return %arg0, %c0_i32 : i32, i32
  }
}

module attributes {stable_mosaic.version = 11 : i64} {
  func.func @_agg_fused_kernel(%arg0: i32, %arg1: i32, %arg2: memref<256x128xf32, #tpu.memory_space<vmem>>, %arg3: memref<256x512xbf16, #tpu.memory_space<vmem>>, %arg4: memref<512x128xf32, #tpu.memory_space<vmem>>, %arg5: memref<256x128xf32, #tpu.memory_space<vmem>>, %arg6: memref<256x128xf32, #tpu.memory_space<vmem>>, %arg7: memref<256x128xf32, #tpu.memory_space<vmem>>) attributes {dimension_semantics = [#tpu.dimension_semantics<parallel>, #tpu.dimension_semantics<arbitrary>], iteration_bounds = array<i64: 2, 1>, scalar_prefetch = 0 : i64, scratch_operands = 1 : i64, tpu.core_type = #tpu.core_type<tc>, window_params = [{transform_indices = @transform_0, window_bounds = array<i64: 256, 128>}, {transform_indices = @transform_1, window_bounds = array<i64: 256, 512>}, {transform_indices = @transform_2, window_bounds = array<i64: 512, 128>}, {transform_indices = @transform_3, window_bounds = array<i64: 256, 128>}, {transform_indices = @transform_4, window_bounds = array<i64: 256, 128>}]} {
    %c0_i32 = arith.constant 0 : i32
    %0 = arith.cmpi eq, %arg1, %c0_i32 : i32
    %1 = arith.extui %0 : i1 to i32
    %c0_i32_0 = arith.constant 0 : i32
    %2 = arith.cmpi ne, %1, %c0_i32_0 : i32
    scf.if %2 {
      %cst_10 = arith.constant 0.000000e+00 : f32
      %13 = vector.broadcast %cst_10 : f32 to vector<256x128xf32>
      %c0_11 = arith.constant 0 : index
      %c0_12 = arith.constant 0 : index
      %14 = vector.load %arg7[%c0_11, %c0_12] : memref<256x128xf32, #tpu.memory_space<vmem>>, vector<256x128xf32>
      tpu.vector_store %arg7[%c0_11, %c0_12], %13 {strides = array<i32>} : memref<256x128xf32, #tpu.memory_space<vmem>>, vector<256x128xf32>,
    } else {
    }
    %c0 = arith.constant 0 : index
    %c0_1 = arith.constant 0 : index
    %3 = vector.load %arg7[%c0, %c0_1] : memref<256x128xf32, #tpu.memory_space<vmem>>, vector<256x128xf32>
    %c0_2 = arith.constant 0 : index
    %c0_3 = arith.constant 0 : index
    %4 = vector.load %arg3[%c0_2, %c0_3] : memref<256x512xbf16, #tpu.memory_space<vmem>>, vector<256x512xbf16>
    %c0_4 = arith.constant 0 : index
    %c0_5 = arith.constant 0 : index
    %5 = vector.load %arg4[%c0_4, %c0_5] : memref<512x128xf32, #tpu.memory_space<vmem>>, vector<512x128xf32>
    %6 = arith.truncf %5 : vector<512x128xf32> to vector<512x128xbf16>
    %cst = arith.constant dense<0.000000e+00> : vector<256x128xf32>
    %7 = tpu.matmul %4, %6, %cst {dimension_numbers = #tpu.dot_dimension_numbers<[1], [0], [0], [1], [0, 0, 1, 1], [], []>} : vector<256x512xbf16>, vector<512x128xbf16>, vector<256x128xf32> -> vector<256x128xf32>
    %8 = arith.addf %3, %7 : vector<256x128xf32>
    %c0_6 = arith.constant 0 : index
    %c0_7 = arith.constant 0 : index
    %9 = vector.load %arg7[%c0_6, %c0_7] : memref<256x128xf32, #tpu.memory_space<vmem>>, vector<256x128xf32>
    tpu.vector_store %arg7[%c0_6, %c0_7], %8 {strides = array<i32>} : memref<256x128xf32, #tpu.memory_space<vmem>>, vector<256x128xf32>,
    %c0_i32_8 = arith.constant 0 : i32
    %10 = arith.cmpi eq, %arg1, %c0_i32_8 : i32
    %11 = arith.extui %10 : i1 to i32
    %c0_i32_9 = arith.constant 0 : i32
    %12 = arith.cmpi ne, %11, %c0_i32_9 : i32
    scf.if %12 {
      %c0_10 = arith.constant 0 : index
      %c0_11 = arith.constant 0 : index
      %13 = vector.load %arg7[%c0_10, %c0_11] : memref<256x128xf32, #tpu.memory_space<vmem>>, vector<256x128xf32>
      %c0_12 = arith.constant 0 : index
      %c0_13 = arith.constant 0 : index
      %14 = vector.load %arg5[%c0_12, %c0_13] : memref<256x128xf32, #tpu.memory_space<vmem>>, vector<256x128xf32>
      tpu.vector_store %arg5[%c0_12, %c0_13], %13 {strides = array<i32>} : memref<256x128xf32, #tpu.memory_space<vmem>>, vector<256x128xf32>,
      %c0_14 = arith.constant 0 : index
      %c0_15 = arith.constant 0 : index
      %15 = vector.load %arg2[%c0_14, %c0_15] : memref<256x128xf32, #tpu.memory_space<vmem>>, vector<256x128xf32>
      %16 = arith.addf %15, %13 : vector<256x128xf32>
      %cst_16 = arith.constant 0.333333343 : f32
      %17 = vector.broadcast %cst_16 : f32 to vector<256x128xf32>
      %18 = arith.mulf %16, %17 : vector<256x128xf32>
      %c0_17 = arith.constant 0 : index
      %c0_18 = arith.constant 0 : index
      %19 = vector.load %arg6[%c0_17, %c0_18] : memref<256x128xf32, #tpu.memory_space<vmem>>, vector<256x128xf32>
      tpu.vector_store %arg6[%c0_17, %c0_18], %18 {strides = array<i32>} : memref<256x128xf32, #tpu.memory_space<vmem>>, vector<256x128xf32>,
    } else {
    }
    return
  }
  func.func @transform_0(%arg0: i32, %arg1: i32) -> (i32, i32) {
    %c0_i32 = arith.constant 0 : i32
    %c0_i32_0 = arith.constant 0 : i32
    return %arg0, %c0_i32 : i32, i32
  }
  func.func @transform_1(%arg0: i32, %arg1: i32) -> (i32, i32) {
    %c0_i32 = arith.constant 0 : i32
    return %arg0, %arg1 : i32, i32
  }
  func.func @transform_2(%arg0: i32, %arg1: i32) -> (i32, i32) {
    %c0_i32 = arith.constant 0 : i32
    %c0_i32_0 = arith.constant 0 : i32
    return %arg1, %c0_i32 : i32, i32
  }
  func.func @transform_3(%arg0: i32, %arg1: i32) -> (i32, i32) {
    %c0_i32 = arith.constant 0 : i32
    %c0_i32_0 = arith.constant 0 : i32
    return %arg0, %c0_i32 : i32, i32
  }
  func.func @transform_4(%arg0: i32, %arg1: i32) -> (i32, i32) {
    %c0_i32 = arith.constant 0 : i32
    %c0_i32_0 = arith.constant 0 : i32
    return %arg0, %c0_i32 : i32, i32
  }
}

module attributes {stable_mosaic.version = 11 : i64} {
  func.func @_bpr_loss_kernel(%arg0: i32, %arg1: memref<8x128xf32, #tpu.memory_space<vmem>>, %arg2: memref<8x128xf32, #tpu.memory_space<vmem>>, %arg3: memref<8x128xf32, #tpu.memory_space<vmem>>, %arg4: memref<1xf32, #tpu.memory_space<smem>>, %arg5: memref<1x1xf32, #tpu.memory_space<vmem>>) attributes {dimension_semantics = [#tpu.dimension_semantics<arbitrary>], iteration_bounds = array<i64: 1>, scalar_prefetch = 0 : i64, scratch_operands = 1 : i64, tpu.core_type = #tpu.core_type<tc>, window_params = [{transform_indices = @transform_0, window_bounds = array<i64: 8, 128>}, {transform_indices = @transform_1, window_bounds = array<i64: 8, 128>}, {transform_indices = @transform_2, window_bounds = array<i64: 8, 128>}, {transform_indices = @transform_3, window_bounds = array<i64: 1>}]} {
    %c0_i32 = arith.constant 0 : i32
    %0 = arith.cmpi eq, %arg0, %c0_i32 : i32
    %1 = arith.extui %0 : i1 to i32
    %c0_i32_0 = arith.constant 0 : i32
    %2 = arith.cmpi ne, %1, %c0_i32_0 : i32
    scf.if %2 {
      %cst_16 = arith.constant 0.000000e+00 : f32
      %38 = vector.broadcast %cst_16 : f32 to vector<1x1xf32>
      %c0_17 = arith.constant 0 : index
      %c0_18 = arith.constant 0 : index
      %39 = vector.load %arg5[%c0_17, %c0_18] : memref<1x1xf32, #tpu.memory_space<vmem>>, vector<1x1xf32>
      tpu.vector_store %arg5[%c0_17, %c0_18], %38 {strides = array<i32>} : memref<1x1xf32, #tpu.memory_space<vmem>>, vector<1x1xf32>,
    } else {
    }
    %c0 = arith.constant 0 : index
    %c0_1 = arith.constant 0 : index
    %3 = vector.load %arg1[%c0, %c0_1] : memref<8x128xf32, #tpu.memory_space<vmem>>, vector<8x128xf32>
    %c0_2 = arith.constant 0 : index
    %c0_3 = arith.constant 0 : index
    %4 = vector.load %arg2[%c0_2, %c0_3] : memref<8x128xf32, #tpu.memory_space<vmem>>, vector<8x128xf32>
    %5 = arith.mulf %3, %4 : vector<8x128xf32>
    %cst = arith.constant dense<0.000000e+00> : vector<8xf32>
    %6 = vector.multi_reduction <add>, %5, %cst [1] : vector<8x128xf32> to vector<8xf32>
    %7 = vector.shape_cast %6 : vector<8xf32> to vector<8x1xf32>
    %c0_4 = arith.constant 0 : index
    %c0_5 = arith.constant 0 : index
    %8 = vector.load %arg3[%c0_4, %c0_5] : memref<8x128xf32, #tpu.memory_space<vmem>>, vector<8x128xf32>
    %9 = arith.mulf %3, %8 : vector<8x128xf32>
    %cst_6 = arith.constant dense<0.000000e+00> : vector<8xf32>
    %10 = vector.multi_reduction <add>, %9, %cst_6 [1] : vector<8x128xf32> to vector<8xf32>
    %11 = vector.shape_cast %10 : vector<8xf32> to vector<8x1xf32>
    %12 = arith.subf %11, %7 : vector<8x1xf32>
    %cst_7 = arith.constant 0.000000e+00 : f32
    %13 = vector.broadcast %cst_7 : f32 to vector<8x1xf32>
    %14 = arith.maximumf %13, %12 : vector<8x1xf32>
    %15 = vector.broadcast %cst_7 : f32 to vector<8x1xf32>
    %16 = arith.subf %15, %12 : vector<8x1xf32>
    %17 = arith.cmpf one, %16, %16 : vector<8x1xf32>
    %18 = vector.broadcast %cst_7 : f32 to vector<8x1xf32>
    %19 = arith.addf %18, %12 : vector<8x1xf32>
    %20 = math.absf %16 : vector<8x1xf32>
    %cst_8 = arith.constant 0.000000e+00 : f32
    %21 = vector.broadcast %cst_8 : f32 to vector<8x1xf32>
    %22 = arith.subf %21, %20 : vector<8x1xf32>
    %23 = math.exp %22 : vector<8x1xf32>
    %24 = math.log1p %23 : vector<8x1xf32>
    %25 = arith.addf %14, %24 : vector<8x1xf32>
    %26 = arith.select %17, %19, %25 : vector<8x1xi1>, vector<8x1xf32>
    %c0_9 = arith.constant 0 : index
    %c0_10 = arith.constant 0 : index
    %27 = vector.load %arg5[%c0_9, %c0_10] : memref<1x1xf32, #tpu.memory_space<vmem>>, vector<1x1xf32>
    %28 = vector.shape_cast %26 : vector<8x1xf32> to vector<1x8x1xf32>
    %cst_11 = arith.constant dense<0.000000e+00> : vector<1xf32>
    %29 = vector.multi_reduction <add>, %28, %cst_11 [1, 2] : vector<1x8x1xf32> to vector<1xf32>
    %30 = vector.shape_cast %29 : vector<1xf32> to vector<1x1x1xf32>
    %31 = vector.extract %30[0, 0, 0] : f32 from vector<1x1x1xf32>
    %32 = vector.broadcast %31 : f32 to vector<1x1xf32>
    %33 = arith.addf %27, %32 : vector<1x1xf32>
    %c0_12 = arith.constant 0 : index
    %c0_13 = arith.constant 0 : index
    %34 = vector.load %arg5[%c0_12, %c0_13] : memref<1x1xf32, #tpu.memory_space<vmem>>, vector<1x1xf32>
    tpu.vector_store %arg5[%c0_12, %c0_13], %33 {strides = array<i32>} : memref<1x1xf32, #tpu.memory_space<vmem>>, vector<1x1xf32>,
    %c0_i32_14 = arith.constant 0 : i32
    %35 = arith.cmpi eq, %arg0, %c0_i32_14 : i32
    %36 = arith.extui %35 : i1 to i32
    %c0_i32_15 = arith.constant 0 : i32
    %37 = arith.cmpi ne, %36, %c0_i32_15 : i32
    scf.if %37 {
      %c0_16 = arith.constant 0 : index
      %c0_17 = arith.constant 0 : index
      %38 = vector.load %arg5[%c0_16, %c0_17] : memref<1x1xf32, #tpu.memory_space<vmem>>, vector<1x1xf32>
      %39 = vector.extract %38[0, 0] : f32 from vector<1x1xf32>
      %cst_18 = arith.constant 1.250000e-01 : f32
      %40 = arith.mulf %39, %cst_18 : f32
      %c0_19 = arith.constant 0 : index
      %41 = memref.load %arg4[%c0_19] : memref<1xf32, #tpu.memory_space<smem>>
      memref.store %40, %arg4[%c0_19] : memref<1xf32, #tpu.memory_space<smem>>
    } else {
    }
    return
  }
  func.func @transform_0(%arg0: i32) -> (i32, i32) {
    %c0_i32 = arith.constant 0 : i32
    %c0_i32_0 = arith.constant 0 : i32
    return %arg0, %c0_i32 : i32, i32
  }
  func.func @transform_1(%arg0: i32) -> (i32, i32) {
    %c0_i32 = arith.constant 0 : i32
    %c0_i32_0 = arith.constant 0 : i32
    return %arg0, %c0_i32 : i32, i32
  }
  func.func @transform_2(%arg0: i32) -> (i32, i32) {
    %c0_i32 = arith.constant 0 : i32
    %c0_i32_0 = arith.constant 0 : i32
    return %arg0, %c0_i32 : i32, i32
  }
  func.func @transform_3(%arg0: i32) -> i32 {
    %c0_i32 = arith.constant 0 : i32
    %c0_i32_0 = arith.constant 0 : i32
    return %c0_i32 : i32
  }
}

</mosaic_0001>

<bundles_post_ra>
// kernel: lightgcn_forward.3
= control target key start
LH: loop header
LB: loop body
LE: loop exit
PB: predicated region body
PF: predicated region fallthrough
CT: control target
= control target key end

     0   :  { %s1995_s15 = smov 0   ;;  %s1997_s16 = smov 0   ;;  %s2411_s0 = inlined_call_operand.vmem [shape: f32[512,128], index: 0, kind: input, shape index: {}, may-alias: {0,2}]   ;;  %s2412_s1 = inlined_call_operand.vmem [shape: bf16[512,512], index: 1, kind: input, shape index: {}]   ;;  %s2413_s2 = inlined_call_operand.vmem [shape: f32[512,128], index: 2, kind: input, shape index: {}, may-alias: {0,2}]   ;;  %s2414_s3 = inlined_call_operand.vmem [shape: f32[512,128], index: 3, kind: output, shape index: {0}]   ;;  %s2415_s4 = inlined_call_operand.vmem [shape: f32[512,128], index: 4, kind: output, shape index: {1}]  }
   0x1   :  { %s1999_s17 = smov 0  }
   0x2 LB: > { %s27_s18 = sadd.s32 1, %s1964_s16  ;;  %p1525_p0 = scmp.ge.s32.totalorder %s1968_s17, 1  ;;  %s1968_s17 = sphi %s1999_s17, %s15_s17   ;;  %s1964_s16 = sphi %s1997_s16, %s2418_s16   ;;  %s1960_s15 = sphi %s1995_s15, %s2417_s15  }
   0x3   : > { %p29_p1 = scmp.ge.s32.totalorder %s27_s18, 2  ;;  %p208_p2 = scmp.lt.s32.totalorder %s1968_s17, 3 }
   0x5   : > { %s2420_s18 = smov (%p29_p1, %s27_s18), 0  ;;  %p209_p3 = pnand %p1525_p0, %p208_p2 }
   0x6   : > { %v439_v0 = vld [vmem:[%s2413_s2 + $0x80] sm:$0xff] (!%p209_p3)  ;;  %v440_v1 = vld [vmem:[%s2413_s2 + $0x88] sm:$0xff] (!%p209_p3)  ;;  %v441_v11 = vld [vmem:[%s2413_s2 + $0x90] sm:$0xff] (!%p209_p3)  ;;  %s1526_s7 = sshll.u32 (!%p209_p3), %s1960_s15, 5 }
   0x7   : > { %212 = sbr.rel (%p209_p3) target bundleno = 385 (0x181), region = 32  ;;  %v471_v2 = vld [vmem:[%s2413_s2 + $0x180] sm:$0xff] (!%p209_p3)  ;;  %v495_v3 = vpack.c.bf16 (!%p209_p3), %v440_v1, %v439_v0  ;;  %v472_v4 = vld [vmem:[%s2413_s2 + $0x188] sm:$0xff] (!%p209_p3)  ;;  %v442_v13 = vld [vmem:[%s2413_s2 + $0x98] sm:$0xff] (!%p209_p3)  ;;  %p2099_p4 = scmp.lt.s32.totalorder (!%p209_p3), %s1526_s7, 63 }
   0x8   : > { %v423_v5 = vld [vmem:[%s2413_s2] sm:$0xff] (!%p209_p3)  ;;  %v424_v6 = vld [vmem:[%s2413_s2 + $0x8] sm:$0xff] (!%p209_p3)  ;;  %v511_v7 = vpack.c.bf16 (!%p209_p3), %v472_v4, %v471_v2  ;;  %v473_v14 = vld [vmem:[%s2413_s2 + $0x190] sm:$0xff] (!%p209_p3)  ;;  %v496_v16 = vpack.c.bf16 (!%p209_p3), %v442_v13, %v441_v11 }
   0x9   : > { %v487_v8 = vpack.c.bf16 (!%p209_p3), %v424_v6, %v423_v5  ;;  %v455_v9 = vld [vmem:[%s2413_s2 + $0x100] sm:$0xff] (!%p209_p3)  ;;  %v456_v10 = vld [vmem:[%s2413_s2 + $0x108] sm:$0xff] (!%p209_p3)  ;;  %1602 = vmatprep.subr.bf16.mxu0 (!%p209_p3), %v495_v3  ;;  %v474_v15 = vld [vmem:[%s2413_s2 + $0x198] sm:$0xff] (!%p209_p3) }
   0xa   : > { %v503_v12 = vpack.c.bf16 (!%p209_p3), %v456_v10, %v455_v9  ;;  %1714 = vmatprep.subr.bf16.mxu1 (!%p209_p3), %v511_v7  ;;  %v512_v17 = vpack.c.bf16 (!%p209_p3), %v474_v15, %v473_v14  ;;  %v425_v18 = vld [vmem:[%s2413_s2 + $0x10] sm:$0xff] (!%p209_p3)  ;;  %v426_v19 = vld [vmem:[%s2413_s2 + $0x18] sm:$0xff] (!%p209_p3)  ;;  %v443_v23 = vld [vmem:[%s2413_s2 + $0xa0] sm:$0xff] (!%p209_p3) }
   0xb   : > { %1603 = vmatpush3.bf16.msra.mxu0 (!%p209_p3), %v487_v8  ;;  %v457_v20 = vld [vmem:[%s2413_s2 + $0x110] sm:$0xff] (!%p209_p3)  ;;  %v488_v21 = vpack.c.bf16 (!%p209_p3), %v426_v19, %v425_v18  ;;  %v458_v22 = vld [vmem:[%s2413_s2 + $0x118] sm:$0xff] (!%p209_p3)  ;;  %v444_v24 = vld [vmem:[%s2413_s2 + $0xa8] sm:$0xff] (!%p209_p3) }
   0xc   : > { %1715 = vmatpush3.bf16.msra.mxu1 (!%p209_p3), %v503_v12  ;;  %1604 = vmatprep.subr.bf16.mxu0 (!%p209_p3), %v496_v16  ;;  %v504_v25 = vpack.c.bf16 (!%p209_p3), %v458_v22, %v457_v20  ;;  %v497_v26 = vpack.c.bf16 (!%p209_p3), %v444_v24, %v443_v23  ;;  %v475_v27 = vld [vmem:[%s2413_s2 + $0x1a0] sm:$0xff] (!%p209_p3)  ;;  %v476_v28 = vld [vmem:[%s2413_s2 + $0x1a8] sm:$0xff] (!%p209_p3)  ;;  %v445_v35 = vld [vmem:[%s2413_s2 + $0xb0] sm:$0xff] (!%p209_p3) }
   0xd   : > { %1716 = vmatprep.subr.bf16.mxu1 (!%p209_p3), %v512_v17  ;;  %v427_v29 = vld [vmem:[%s2413_s2 + $0x20] sm:$0xff] (!%p209_p3)  ;;  %v513_v30 = vpack.c.bf16 (!%p209_p3), %v476_v28, %v475_v27  ;;  %v428_v31 = vld [vmem:[%s2413_s2 + $0x28] sm:$0xff] (!%p209_p3)  ;;  %v446_v36 = vld [vmem:[%s2413_s2 + $0xb8] sm:$0xff] (!%p209_p3) }
   0xe   : > { %v459_v32 = vld [vmem:[%s2413_s2 + $0x120] sm:$0xff]  ;;  %v460_v33 = vld [vmem:[%s2413_s2 + $0x128] sm:$0xff]  ;;  %v489_v34 = vpack.c.bf16 %v428_v31, %v427_v29  ;;  %v477_v37 = vld [vmem:[%s2413_s2 + $0x1b0] sm:$0xff]  ;;  %v498_v39 = vpack.c.bf16 %v446_v36, %v445_v35  ;;  %s2422_s7 = smov (!%p2099_p4, %s1526_s7), 63 }
   0xf   : > { %1605 = vmatpush3.bf16.msra.mxu0 %v488_v21  ;;  %v505_v38 = vpack.c.bf16 %v460_v33, %v459_v32  ;;  %v478_v40 = vld [vmem:[%s2413_s2 + $0x1b8] sm:$0xff]  ;;  %v429_v41 = vld [vmem:[%s2413_s2 + $0x30] sm:$0xff]  ;;  %v447_v46 = vld [vmem:[%s2413_s2 + $0xc0] sm:$0xff]  ;;  %s1601_s24 = sshll.u32 %s2422_s7, 4  ;;  %s1527_s22 = sshll.u32 %s2422_s7, 3 }
  0x10   : > { %1717 = vmatpush3.bf16.msra.mxu1 %v504_v25  ;;  %1606 = vmatprep.subr.bf16.mxu0 %v497_v26  ;;  %v430_v42 = vld [vmem:[%s2413_s2 + $0x38] sm:$0xff]  ;;  %v514_v43 = vpack.c.bf16 %v478_v40, %v477_v37  ;;  %v461_v44 = vld [vmem:[%s2413_s2 + $0x130] sm:$0xff]  ;;  %v448_v47 = vld [vmem:[%s2413_s2 + $0xc8] sm:$0xff]  ;;  %s2194_s23 = scalar_lea.vmem %s2412_s1, %s1601_s24  ;;  %s2294_s27 = scalar_lea.vmem %s2411_s0, %s1527_s22 }
  0x11   : > { %1718 = vmatprep.subr.bf16.mxu1 %v513_v30  ;;  %v462_v45 = vld [vmem:[%s2413_s2 + $0x138] sm:$0xff]  ;;  %v479_v48 = vld [vmem:[%s2413_s2 + $0x1c0] sm:$0xff]  ;;  %v480_v49 = vld [vmem:[%s2413_s2 + $0x1c8] sm:$0xff]  ;;  %v490_v50 = vpack.c.bf16 %v430_v42, %v429_v41  ;;  %v499_v52 = vpack.c.bf16 %v448_v47, %v447_v46  ;;  %s2299_s7 = scalar_lea.vmem %s2414_s3, %s1527_s22  ;;  %s2305_s24 = scalar_lea.vmem %s2415_s4, %s1527_s22 }
  0x12   : > { %v506_v51 = vpack.c.bf16 %v462_v45, %v461_v44  ;;  %v431_v53 = vld [vmem:[%s2413_s2 + $0x40] sm:$0xff]  ;;  %v432_v54 = vld [vmem:[%s2413_s2 + $0x48] sm:$0xff]  ;;  %v515_v56 = vpack.c.bf16 %v480_v49, %v479_v48  ;;  %v449_v58 = vld [vmem:[%s2413_s2 + $0xd0] sm:$0xff] }
  0x13   : > { %1607 = vmatpush3.bf16.msra.mxu0 %v489_v34  ;;  %v463_v55 = vld [vmem:[%s2413_s2 + $0x140] sm:$0xff]  ;;  %v464_v57 = vld [vmem:[%s2413_s2 + $0x148] sm:$0xff]  ;;  %v450_v59 = vld [vmem:[%s2413_s2 + $0xd8] sm:$0xff]  ;;  %v491_v62 = vpack.c.bf16 %v432_v54, %v431_v53 }
  0x14   : > { %1719 = vmatpush3.bf16.msra.mxu1 %v505_v38  ;;  %1608 = vmatprep.subr.bf16.mxu0 %v498_v39  ;;  %v481_v60 = vld [vmem:[%s2413_s2 + $0x1d0] sm:$0xff]  ;;  %v482_v61 = vld [vmem:[%s2413_s2 + $0x1d8] sm:$0xff]  ;;  %v507_v0 = vpack.c.bf16 %v464_v57, %v463_v55  ;;  %v500_v1 = vpack.c.bf16 %v450_v59, %v449_v58  ;;  %v451_v6 = vld [vmem:[%s2413_s2 + $0xe0] sm:$0xff] }
  0x15   : > { %1720 = vmatprep.subr.bf16.mxu1 %v514_v43  ;;  %v433_v63 = vld [vmem:[%s2413_s2 + $0x50] sm:$0xff]  ;;  %v434_v2 = vld [vmem:[%s2413_s2 + $0x58] sm:$0xff]  ;;  %v516_v5 = vpack.c.bf16 %v482_v61, %v481_v60  ;;  %v452_v7 = vld [vmem:[%s2413_s2 + $0xe8] sm:$0xff] }
  0x16   : > { %v465_v3 = vld [vmem:[%s2413_s2 + $0x150] sm:$0xff]  ;;  %v466_v4 = vld [vmem:[%s2413_s2 + $0x158] sm:$0xff]  ;;  %v483_v8 = vld [vmem:[%s2413_s2 + $0x1e0] sm:$0xff]  ;;  %v492_v12 = vpack.c.bf16 %v434_v2, %v433_v63  ;;  %v501_v17 = vpack.c.bf16 %v452_v7, %v451_v6 }
  0x17   : > { %1609 = vmatpush3.bf16.msra.mxu0 %v490_v50  ;;  %v484_v9 = vld [vmem:[%s2413_s2 + $0x1e8] sm:$0xff]  ;;  %v435_v10 = vld [vmem:[%s2413_s2 + $0x60] sm:$0xff]  ;;  %v453_v15 = vld [vmem:[%s2413_s2 + $0xf0] sm:$0xff]  ;;  %v508_v16 = vpack.c.bf16 %v466_v4, %v465_v3 }
  0x18   : > { %1721 = vmatpush3.bf16.msra.mxu1 %v506_v51  ;;  %1610 = vmatprep.subr.bf16.mxu0 %v499_v52  ;;  %v436_v11 = vld [vmem:[%s2413_s2 + $0x68] sm:$0xff]  ;;  %v467_v13 = vld [vmem:[%s2413_s2 + $0x160] sm:$0xff]  ;;  %v454_v18 = vld [vmem:[%s2413_s2 + $0xf8] sm:$0xff]  ;;  %v517_v19 = vpack.c.bf16 %v484_v9, %v483_v8 }
  0x19   : > { %1722 = vmatprep.subr.bf16.mxu1 %v515_v56  ;;  %v468_v14 = vld [vmem:[%s2413_s2 + $0x168] sm:$0xff]  ;;  %v485_v20 = vld [vmem:[%s2413_s2 + $0x1f0] sm:$0xff]  ;;  %v486_v22 = vld [vmem:[%s2413_s2 + $0x1f8] sm:$0xff]  ;;  %v493_v24 = vpack.c.bf16 %v436_v11, %v435_v10  ;;  %v502_v27 = vpack.c.bf16 %v454_v18, %v453_v15 }
  0x1a   : > { %v1852_v21 = vld [vmem:[%s2194_s23 + $0x4] ss:$16 sps:$4 sm:$0xff]   ;;  %v1855_v23 = vld [vmem:[%s2194_s23 + $0xc] ss:$16 sps:$4 sm:$0xff]   ;;  %v509_v26 = vpack.c.bf16 %v468_v14, %v467_v13  ;;  %v518_v29 = vpack.c.bf16 %v486_v22, %v485_v20  ;;  %v1850_v34 = vld [vmem:[%s2194_s23] ss:$16 sps:$4 sm:$0xff]  }
  0x1b   : > { %1611 = vmatpush3.bf16.msra.mxu0 %v491_v62  ;;  %v437_v25 = vld [vmem:[%s2413_s2 + $0x70] sm:$0xff]  ;;  %871 = vmatprep.mubr.bf16.mxu0 %v1852_v21  ;;  %v438_v28 = vld [vmem:[%s2413_s2 + $0x78] sm:$0xff] }
  0x1c   : > { %1723 = vmatpush3.bf16.msra.mxu1 %v507_v0  ;;  %1612 = vmatprep.subr.bf16.mxu0 %v500_v1  ;;  %v469_v30 = vld [vmem:[%s2413_s2 + $0x170] sm:$0xff]  ;;  %v470_v31 = vld [vmem:[%s2413_s2 + $0x178] sm:$0xff]  ;;  %v494_v32 = vpack.c.bf16 %v438_v28, %v437_v25 }
  0x1d   : > { %1724 = vmatprep.subr.bf16.mxu1 %v516_v5  ;;  %1032 = vmatprep.mubr.bf16.mxu1 %v1855_v23  ;;  %v510_v33 = vpack.c.bf16 %v470_v31, %v469_v30  ;;  %v1853_v35 = vld [vmem:[%s2194_s23 + $0x8] ss:$16 sps:$4 sm:$0xff]   ;;  %v1856_v36 = vld [vmem:[%s2194_s23 + $0x24] ss:$16 sps:$4 sm:$0xff]   ;;  %v1858_v37 = vld [vmem:[%s2194_s23 + $0x2c] ss:$16 sps:$4 sm:$0xff]  }
  0x1e   : > { %v1860_v38 = vld [vmem:[%s2194_s23 + $0x20] ss:$16 sps:$4 sm:$0xff]   ;;  %v1861_v39 = vld [vmem:[%s2194_s23 + $0x28] ss:$16 sps:$4 sm:$0xff]   ;;  %v1862_v40 = vld [vmem:[%s2194_s23 + $0x44] ss:$16 sps:$4 sm:$0xff]  }
  0x1f   : > { %1613 = vmatpush3.bf16.msra.mxu0 %v492_v12  ;;  %v1864_v41 = vld [vmem:[%s2194_s23 + $0x4c] ss:$16 sps:$4 sm:$0xff]   ;;  %v1866_v42 = vld [vmem:[%s2194_s23 + $0x40] ss:$16 sps:$4 sm:$0xff]   ;;  %v1867_v43 = vld [vmem:[%s2194_s23 + $0x48] ss:$16 sps:$4 sm:$0xff]  }
  0x20   : > { %1725 = vmatpush3.bf16.msra.mxu1 %v508_v16  ;;  %1614 = vmatprep.subr.bf16.mxu0 %v501_v17  ;;  %v1868_v44 = vld [vmem:[%s2194_s23 + $0x64] ss:$16 sps:$4 sm:$0xff]   ;;  %v1870_v45 = vld [vmem:[%s2194_s23 + $0x6c] ss:$16 sps:$4 sm:$0xff]   ;;  %v1872_v46 = vld [vmem:[%s2194_s23 + $0x60] ss:$16 sps:$4 sm:$0xff]  }
  0x21   : > { %1726 = vmatprep.subr.bf16.mxu1 %v517_v19  ;;  %v1873_v47 = vld [vmem:[%s2194_s23 + $0x68] ss:$16 sps:$4 sm:$0xff]   ;;  %v1874_v48 = vld [vmem:[%s2194_s23 + $0x84] ss:$16 sps:$4 sm:$0xff]   ;;  %v1876_v49 = vld [vmem:[%s2194_s23 + $0x8c] ss:$16 sps:$4 sm:$0xff]  }
  0x22   : > { %v1878_v50 = vld [vmem:[%s2194_s23 + $0x80] ss:$16 sps:$4 sm:$0xff]   ;;  %v1879_v51 = vld [vmem:[%s2194_s23 + $0x88] ss:$16 sps:$4 sm:$0xff]   ;;  %v1880_v52 = vld [vmem:[%s2194_s23 + $0xa4] ss:$16 sps:$4 sm:$0xff]  }
  0x23   : > { %1615 = vmatpush3.bf16.msra.mxu0 %v493_v24  ;;  %v1882_v53 = vld [vmem:[%s2194_s23 + $0xac] ss:$16 sps:$4 sm:$0xff]   ;;  %v1884_v54 = vld [vmem:[%s2194_s23 + $0xa0] ss:$16 sps:$4 sm:$0xff]   ;;  %v1885_v55 = vld [vmem:[%s2194_s23 + $0xa8] ss:$16 sps:$4 sm:$0xff]  }
  0x24   : > { %1727 = vmatpush3.bf16.msra.mxu1 %v509_v26  ;;  %1616 = vmatprep.subr.bf16.mxu0 %v502_v27  ;;  %v1886_v56 = vld [vmem:[%s2194_s23 + $0xc4] ss:$16 sps:$4 sm:$0xff]   ;;  %v1888_v57 = vld [vmem:[%s2194_s23 + $0xcc] ss:$16 sps:$4 sm:$0xff]   ;;  %v1890_v58 = vld [vmem:[%s2194_s23 + $0xc0] ss:$16 sps:$4 sm:$0xff]  }
  0x25   : > { %1728 = vmatprep.subr.bf16.mxu1 %v518_v29  ;;  %v1891_v59 = vld [vmem:[%s2194_s23 + $0xc8] ss:$16 sps:$4 sm:$0xff]   ;;  %v1892_v60 = vld [vmem:[%s2194_s23 + $0xe4] ss:$16 sps:$4 sm:$0xff]   ;;  %v1894_v61 = vld [vmem:[%s2194_s23 + $0xec] ss:$16 sps:$4 sm:$0xff]  }
  0x26   : > { %v1896_v62 = vld [vmem:[%s2194_s23 + $0xe0] ss:$16 sps:$4 sm:$0xff]   ;;  %v1897_v63 = vld [vmem:[%s2194_s23 + $0xe8] ss:$16 sps:$4 sm:$0xff]   ;;  %v1898_v0 = vld [vmem:[%s2194_s23 + $0x104] ss:$16 sps:$4 sm:$0xff]  }
  0x27   : > { %1617 = vmatpush3.bf16.msra.mxu0 %v494_v32  ;;  %v1900_v1 = vld [vmem:[%s2194_s23 + $0x10c] ss:$16 sps:$4 sm:$0xff]   ;;  %v1902_v2 = vld [vmem:[%s2194_s23 + $0x100] ss:$16 sps:$4 sm:$0xff]   ;;  %v1903_v3 = vld [vmem:[%s2194_s23 + $0x108] ss:$16 sps:$4 sm:$0xff]  }
  0x28   : > { %1729 = vmatpush3.bf16.msra.mxu1 %v510_v33  ;;  %v1904_v4 = vld [vmem:[%s2194_s23 + $0x124] ss:$16 sps:$4 sm:$0xff]   ;;  %v1906_v5 = vld [vmem:[%s2194_s23 + $0x12c] ss:$16 sps:$4 sm:$0xff]   ;;  %v1908_v6 = vld [vmem:[%s2194_s23 + $0x120] ss:$16 sps:$4 sm:$0xff]  }
  0x29   : > { %v1909_v7 = vld [vmem:[%s2194_s23 + $0x128] ss:$16 sps:$4 sm:$0xff]   ;;  %v1910_v8 = vld [vmem:[%s2194_s23 + $0x144] ss:$16 sps:$4 sm:$0xff]   ;;  %v1912_v9 = vld [vmem:[%s2194_s23 + $0x14c] ss:$16 sps:$4 sm:$0xff]  }
  0x2a   : > { %872 = vmatmul.mubr.bf16.vlgmr.msra.gmra.mrb[0].mxu0 %v1850_v34  ;;  %v1914_v10 = vld [vmem:[%s2194_s23 + $0x140] ss:$16 sps:$4 sm:$0xff]   ;;  %v1915_v11 = vld [vmem:[%s2194_s23 + $0x148] ss:$16 sps:$4 sm:$0xff]   ;;  %v1916_v12 = vld [vmem:[%s2194_s23 + $0x164] ss:$16 sps:$4 sm:$0xff]  }
  0x2b   : > { %1033 = vmatmul.mubr.bf16.vlgmr.msra.gmra.mrb[0].mxu1 %v1853_v35  ;;  %879 = vmatprep.mubr.bf16.mxu0 %v1856_v36  ;;  %v1918_v13 = vld [vmem:[%s2194_s23 + $0x16c] ss:$16 sps:$4 sm:$0xff]   ;;  %v1920_v14 = vld [vmem:[%s2194_s23 + $0x160] ss:$16 sps:$4 sm:$0xff]   ;;  %v1921_v15 = vld [vmem:[%s2194_s23 + $0x168] ss:$16 sps:$4 sm:$0xff]  }
  0x2c   : > { %1040 = vmatprep.mubr.bf16.mxu1 %v1858_v37  ;;  %v1922_v16 = vld [vmem:[%s2194_s23 + $0x184] ss:$16 sps:$4 sm:$0xff]   ;;  %v1924_v17 = vld [vmem:[%s2194_s23 + $0x18c] ss:$16 sps:$4 sm:$0xff]   ;;  %v1926_v18 = vld [vmem:[%s2194_s23 + $0x180] ss:$16 sps:$4 sm:$0xff]  }
  0x2d   : > { %v1927_v19 = vld [vmem:[%s2194_s23 + $0x188] ss:$16 sps:$4 sm:$0xff]   ;;  %v1928_v20 = vld [vmem:[%s2194_s23 + $0x1a4] ss:$16 sps:$4 sm:$0xff]   ;;  %v1930_v21 = vld [vmem:[%s2194_s23 + $0x1ac] ss:$16 sps:$4 sm:$0xff]  }
  0x2e   : > { %v1932_v22 = vld [vmem:[%s2194_s23 + $0x1a0] ss:$16 sps:$4 sm:$0xff]   ;;  %v1933_v23 = vld [vmem:[%s2194_s23 + $0x1a8] ss:$16 sps:$4 sm:$0xff]   ;;  %v1934_v24 = vld [vmem:[%s2194_s23 + $0x1c4] ss:$16 sps:$4 sm:$0xff]  }
  0x2f   : > { %v1936_v25 = vld [vmem:[%s2194_s23 + $0x1cc] ss:$16 sps:$4 sm:$0xff]   ;;  %v1938_v26 = vld [vmem:[%s2194_s23 + $0x1c0] ss:$16 sps:$4 sm:$0xff]   ;;  %v1939_v27 = vld [vmem:[%s2194_s23 + $0x1c8] ss:$16 sps:$4 sm:$0xff]  }
  0x30   : > { %v1940_v28 = vld [vmem:[%s2194_s23 + $0x1e4] ss:$16 sps:$4 sm:$0xff]   ;;  %v1942_v29 = vld [vmem:[%s2194_s23 + $0x1ec] ss:$16 sps:$4 sm:$0xff]   ;;  %v1944_v30 = vld [vmem:[%s2194_s23 + $0x1e0] ss:$16 sps:$4 sm:$0xff]  }
  0x31   : > { %v1945_v31 = vld [vmem:[%s2194_s23 + $0x1e8] ss:$16 sps:$4 sm:$0xff]  }
  0x32   : > { %880 = vmatmul.mubr.bf16.gmra.mrb[4].mxu0 %v1860_v38 }
  0x33   : > { %1041 = vmatmul.mubr.bf16.gmra.mrb[4].mxu1 %v1861_v39  ;;  %887 = vmatprep.mubr.bf16.mxu0 %v1862_v40 }
  0x34   : > { %1048 = vmatprep.mubr.bf16.mxu1 %v1864_v41  ;;  %v1292_v41 = vld [vmem:[%s2294_s27] sm:$0xff] }
  0x3a   : > { %888 = vmatmul.mubr.bf16.gmra.mrb[8].mxu0 %v1866_v42 }
  0x3b   : > { %1049 = vmatmul.mubr.bf16.gmra.mrb[8].mxu1 %v1867_v43  ;;  %895 = vmatprep.mubr.bf16.mxu0 %v1868_v44 }
  0x3c   : > { %1056 = vmatprep.mubr.bf16.mxu1 %v1870_v45 }
  0x42   : > { %896 = vmatmul.mubr.bf16.gmra.mrb[12].mxu0 %v1872_v46  ;;  %v1293_v46 = vld [vmem:[%s2294_s27 + $0x8] sm:$0xff] }
  0x43   : > { %1057 = vmatmul.mubr.bf16.gmra.mrb[12].mxu1 %v1873_v47  ;;  %903 = vmatprep.mubr.bf16.mxu0 %v1874_v48 }
  0x44   : > { %1064 = vmatprep.mubr.bf16.mxu1 %v1876_v49 }
  0x4a   : > { %904 = vmatmul.mubr.bf16.gmra.mrb[16].mxu0 %v1878_v50 }
  0x4b   : > { %1065 = vmatmul.mubr.bf16.gmra.mrb[16].mxu1 %v1879_v51  ;;  %911 = vmatprep.mubr.bf16.mxu0 %v1880_v52 }
  0x4c   : > { %1072 = vmatprep.mubr.bf16.mxu1 %v1882_v53 }
  0x52   : > { %912 = vmatmul.mubr.bf16.gmra.mrb[20].mxu0 %v1884_v54 }
  0x53   : > { %1073 = vmatmul.mubr.bf16.gmra.mrb[20].mxu1 %v1885_v55  ;;  %919 = vmatprep.mubr.bf16.mxu0 %v1886_v56 }
  0x54   : > { %1080 = vmatprep.mubr.bf16.mxu1 %v1888_v57 }
  0x5a   : > { %920 = vmatmul.mubr.bf16.gmra.mrb[24].mxu0 %v1890_v58 }
  0x5b   : > { %1081 = vmatmul.mubr.bf16.gmra.mrb[24].mxu1 %v1891_v59  ;;  %927 = vmatprep.mubr.bf16.mxu0 %v1892_v60  ;;  %v1294_v59 = vld [vmem:[%s2294_s27 + $0x10] sm:$0xff] }
  0x5c   : > { %1088 = vmatprep.mubr.bf16.mxu1 %v1894_v61 }
  0x62   : > { %928 = vmatmul.mubr.bf16.gmra.mrb[28].mxu0 %v1896_v62 }
  0x63   : > { %1089 = vmatmul.mubr.bf16.gmra.mrb[28].mxu1 %v1897_v63  ;;  %935 = vmatprep.mubr.bf16.mxu0 %v1898_v0  ;;  %v1295_v0 = vld [vmem:[%s2294_s27 + $0x18] sm:$0xff] }
  0x64   : > { %1096 = vmatprep.mubr.bf16.mxu1 %v1900_v1 }
  0x6a   : > { %936 = vmatmul.mubr.bf16.gmra.mrb[32].mxu0 %v1902_v2 }
  0x6b   : > { %1097 = vmatmul.mubr.bf16.gmra.mrb[32].mxu1 %v1903_v3  ;;  %943 = vmatprep.mubr.bf16.mxu0 %v1904_v4 }
  0x6c   : > { %1104 = vmatprep.mubr.bf16.mxu1 %v1906_v5 }
  0x72   : > { %944 = vmatmul.mubr.bf16.gmra.mrb[36].mxu0 %v1908_v6 }
  0x73   : > { %1105 = vmatmul.mubr.bf16.gmra.mrb[36].mxu1 %v1909_v7  ;;  %951 = vmatprep.mubr.bf16.mxu0 %v1910_v8 }
  0x74   : > { %1112 = vmatprep.mubr.bf16.mxu1 %v1912_v9 }
  0x7a   : > { %952 = vmatmul.mubr.bf16.gmra.mrb[40].mxu0 %v1914_v10 }
  0x7b   : > { %1113 = vmatmul.mubr.bf16.gmra.mrb[40].mxu1 %v1915_v11  ;;  %959 = vmatprep.mubr.bf16.mxu0 %v1916_v12 }
  0x7c   : > { %1120 = vmatprep.mubr.bf16.mxu1 %v1918_v13  ;;  %v1296_v13 = vld [vmem:[%s2294_s27 + $0x20] sm:$0xff] }
  0x82   : > { %960 = vmatmul.mubr.bf16.gmra.mrb[44].mxu0 %v1920_v14 }
  0x83   : > { %1121 = vmatmul.mubr.bf16.gmra.mrb[44].mxu1 %v1921_v15  ;;  %967 = vmatprep.mubr.bf16.mxu0 %v1922_v16 }
  0x84   : > { %1128 = vmatprep.mubr.bf16.mxu1 %v1924_v17 }
  0x8a   : > { %968 = vmatmul.mubr.bf16.gmra.mrb[48].mxu0 %v1926_v18  ;;  %v1297_v18 = vld [vmem:[%s2294_s27 + $0x28] sm:$0xff] }
  0x8b   : > { %1129 = vmatmul.mubr.bf16.gmra.mrb[48].mxu1 %v1927_v19  ;;  %975 = vmatprep.mubr.bf16.mxu0 %v1928_v20 }
  0x8c   : > { %1136 = vmatprep.mubr.bf16.mxu1 %v1930_v21 }
  0x92   : > { %976 = vmatmul.mubr.bf16.gmra.mrb[52].mxu0 %v1932_v22 }
  0x93   : > { %1137 = vmatmul.mubr.bf16.gmra.mrb[52].mxu1 %v1933_v23  ;;  %983 = vmatprep.mubr.bf16.mxu0 %v1934_v24 }
  0x94   : > { %1144 = vmatprep.mubr.bf16.mxu1 %v1936_v25 }
  0x9a   : > { %984 = vmatmul.mubr.bf16.gmra.mrb[56].mxu0 %v1938_v26 }
  0x9b   : > { %1145 = vmatmul.mubr.bf16.gmra.mrb[56].mxu1 %v1939_v27  ;;  %991 = vmatprep.mubr.bf16.mxu0 %v1940_v28 }
  0x9c   : > { %1152 = vmatprep.mubr.bf16.mxu1 %v1942_v29 }
  0xa2   : > { %992 = vmatmul.mubr.bf16.gmra.mrb[60].mxu0 %v1944_v30 }
  0xa3   : > { %1153 = vmatmul.mubr.bf16.gmra.mrb[60].mxu1 %v1945_v31  ;;  %v1298_v31 = vld [vmem:[%s2294_s27 + $0x30] sm:$0xff] }
  0xfd   : > { %v1618_v32 = vpop.f32.mrb[0].mxu0 }
  0xfe   : > { %v1730_v33 = vpop.f32.mrb[0].mxu1  ;;  %v1619_v34 = vpop.f32.mrb[1].mxu0 }
  0xff   : > { %v1620_v35 = vadd.f32 %v1619_v34, %v1618_v32  ;;  %v1731_v36 = vpop.f32.mrb[1].mxu1  ;;  %v1621_v37 = vpop.f32.mrb[2].mxu0 }
 0x100   : > { %v1732_v38 = vadd.f32 %v1731_v36, %v1730_v33  ;;  %v1733_v39 = vpop.f32.mrb[2].mxu1  ;;  %v1622_v40 = vpop.f32.mrb[3].mxu0  ;;  %v1299_v36 = vld [vmem:[%s2294_s27 + $0x38] sm:$0xff] }
 0x101   : > { %v1623_v42 = vadd.f32 %v1622_v40, %v1621_v37  ;;  %v1734_v43 = vpop.f32.mrb[3].mxu1 }
 0x102   : > { %v1035_v44 = vadd.f32 %v1732_v38, %v1620_v35  ;;  %v1735_v45 = vadd.f32 %v1734_v43, %v1733_v39 }
 0x104   : > { %1260 = vst [vmem:[%s2299_s7] sm:$0xff] %v1035_v44  ;;  %v1324_v47 = vadd.f32 %v1292_v41, %v1035_v44  ;;  %v1038_v48 = vadd.f32 %v1735_v45, %v1623_v42 }
 0x105   : > { %v1624_v49 = vpop.f32.mrb[4].mxu0 }
 0x106   : > { %1356 = vst [vmem:[%s2305_s24] sm:$0xff] %v1324_v47  ;;  %1261 = vst [vmem:[%s2299_s7 + $0x8] sm:$0xff] %v1038_v48  ;;  %v1325_v50 = vadd.f32 %v1293_v46, %v1038_v48  ;;  %v1736_v51 = vpop.f32.mrb[4].mxu1  ;;  %v1625_v52 = vpop.f32.mrb[5].mxu0 }
 0x107   : > { %v1626_v53 = vadd.f32 %v1625_v52, %v1624_v49  ;;  %v1737_v54 = vpop.f32.mrb[5].mxu1  ;;  %v1627_v55 = vpop.f32.mrb[6].mxu0  ;;  %v1300_v49 = vld [vmem:[%s2294_s27 + $0x40] sm:$0xff] }
 0x108   : > { %1357 = vst [vmem:[%s2305_s24 + $0x8] sm:$0xff] %v1325_v50  ;;  %v1738_v56 = vadd.f32 %v1737_v54, %v1736_v51  ;;  %v1739_v57 = vpop.f32.mrb[6].mxu1  ;;  %v1628_v58 = vpop.f32.mrb[7].mxu0  ;;  %v1301_v54 = vld [vmem:[%s2294_s27 + $0x48] sm:$0xff] }
 0x109   : > { %v1629_v60 = vadd.f32 %v1628_v58, %v1627_v55  ;;  %v1740_v61 = vpop.f32.mrb[7].mxu1 }
 0x10a   : > { %v1043_v62 = vadd.f32 %v1738_v56, %v1626_v53  ;;  %v1741_v63 = vadd.f32 %v1740_v61, %v1739_v57 }
 0x10c   : > { %1262 = vst [vmem:[%s2299_s7 + $0x10] sm:$0xff] %v1043_v62  ;;  %v1326_v1 = vadd.f32 %v1294_v59, %v1043_v62  ;;  %v1046_v2 = vadd.f32 %v1741_v63, %v1629_v60 }
 0x10d   : > { %v1630_v3 = vpop.f32.mrb[8].mxu0 }
 0x10e   : > { %1358 = vst [vmem:[%s2305_s24 + $0x10] sm:$0xff] %v1326_v1  ;;  %1263 = vst [vmem:[%s2299_s7 + $0x18] sm:$0xff] %v1046_v2  ;;  %v1327_v4 = vadd.f32 %v1295_v0, %v1046_v2  ;;  %v1742_v5 = vpop.f32.mrb[8].mxu1  ;;  %v1631_v6 = vpop.f32.mrb[9].mxu0 }
 0x10f   : > { %v1632_v7 = vadd.f32 %v1631_v6, %v1630_v3  ;;  %v1743_v8 = vpop.f32.mrb[9].mxu1  ;;  %v1633_v9 = vpop.f32.mrb[10].mxu0  ;;  %v1302_v3 = vld [vmem:[%s2294_s27 + $0x50] sm:$0xff] }
 0x110   : > { %1359 = vst [vmem:[%s2305_s24 + $0x18] sm:$0xff] %v1327_v4  ;;  %v1744_v10 = vadd.f32 %v1743_v8, %v1742_v5  ;;  %v1745_v11 = vpop.f32.mrb[10].mxu1  ;;  %v1634_v12 = vpop.f32.mrb[11].mxu0  ;;  %v1303_v8 = vld [vmem:[%s2294_s27 + $0x58] sm:$0xff] }
 0x111   : > { %v1635_v14 = vadd.f32 %v1634_v12, %v1633_v9  ;;  %v1746_v15 = vpop.f32.mrb[11].mxu1 }
 0x112   : > { %v1051_v16 = vadd.f32 %v1744_v10, %v1632_v7  ;;  %v1747_v17 = vadd.f32 %v1746_v15, %v1745_v11 }
 0x114   : > { %1264 = vst [vmem:[%s2299_s7 + $0x20] sm:$0xff] %v1051_v16  ;;  %v1328_v19 = vadd.f32 %v1296_v13, %v1051_v16  ;;  %v1054_v20 = vadd.f32 %v1747_v17, %v1635_v14 }
 0x115   : > { %v1636_v21 = vpop.f32.mrb[12].mxu0 }
 0x116   : > { %1360 = vst [vmem:[%s2305_s24 + $0x20] sm:$0xff] %v1328_v19  ;;  %1265 = vst [vmem:[%s2299_s7 + $0x28] sm:$0xff] %v1054_v20  ;;  %v1329_v22 = vadd.f32 %v1297_v18, %v1054_v20  ;;  %v1748_v23 = vpop.f32.mrb[12].mxu1  ;;  %v1637_v24 = vpop.f32.mrb[13].mxu0 }
 0x117   : > { %v1638_v25 = vadd.f32 %v1637_v24, %v1636_v21  ;;  %v1749_v26 = vpop.f32.mrb[13].mxu1  ;;  %v1639_v27 = vpop.f32.mrb[14].mxu0  ;;  %v1304_v21 = vld [vmem:[%s2294_s27 + $0x60] sm:$0xff] }
 0x118   : > { %1361 = vst [vmem:[%s2305_s24 + $0x28] sm:$0xff] %v1329_v22  ;;  %v1750_v28 = vadd.f32 %v1749_v26, %v1748_v23  ;;  %v1751_v29 = vpop.f32.mrb[14].mxu1  ;;  %v1640_v30 = vpop.f32.mrb[15].mxu0  ;;  %v1305_v26 = vld [vmem:[%s2294_s27 + $0x68] sm:$0xff] }
 0x119   : > { %v1641_v32 = vadd.f32 %v1640_v30, %v1639_v27  ;;  %v1752_v33 = vpop.f32.mrb[15].mxu1 }
 0x11a   : > { %v1059_v34 = vadd.f32 %v1750_v28, %v1638_v25  ;;  %v1753_v35 = vadd.f32 %v1752_v33, %v1751_v29 }
 0x11c   : > { %1266 = vst [vmem:[%s2299_s7 + $0x30] sm:$0xff] %v1059_v34  ;;  %v1330_v37 = vadd.f32 %v1298_v31, %v1059_v34  ;;  %v1062_v38 = vadd.f32 %v1753_v35, %v1641_v32 }
 0x11d   : > { %v1642_v39 = vpop.f32.mrb[16].mxu0 }
 0x11e   : > { %1362 = vst [vmem:[%s2305_s24 + $0x30] sm:$0xff] %v1330_v37  ;;  %1267 = vst [vmem:[%s2299_s7 + $0x38] sm:$0xff] %v1062_v38  ;;  %v1331_v40 = vadd.f32 %v1299_v36, %v1062_v38  ;;  %v1754_v41 = vpop.f32.mrb[16].mxu1  ;;  %v1643_v42 = vpop.f32.mrb[17].mxu0 }
 0x11f   : > { %v1644_v43 = vadd.f32 %v1643_v42, %v1642_v39  ;;  %v1755_v44 = vpop.f32.mrb[17].mxu1  ;;  %v1645_v45 = vpop.f32.mrb[18].mxu0  ;;  %v1306_v39 = vld [vmem:[%s2294_s27 + $0x70] sm:$0xff] }
 0x120   : > { %1363 = vst [vmem:[%s2305_s24 + $0x38] sm:$0xff] %v1331_v40  ;;  %v1756_v46 = vadd.f32 %v1755_v44, %v1754_v41  ;;  %v1757_v47 = vpop.f32.mrb[18].mxu1  ;;  %v1646_v48 = vpop.f32.mrb[19].mxu0  ;;  %v1307_v44 = vld [vmem:[%s2294_s27 + $0x78] sm:$0xff] }
 0x121   : > { %v1647_v50 = vadd.f32 %v1646_v48, %v1645_v45  ;;  %v1758_v51 = vpop.f32.mrb[19].mxu1 }
 0x122   : > { %v1067_v52 = vadd.f32 %v1756_v46, %v1644_v43  ;;  %v1759_v53 = vadd.f32 %v1758_v51, %v1757_v47 }
 0x124   : > { %1268 = vst [vmem:[%s2299_s7 + $0x40] sm:$0xff] %v1067_v52  ;;  %v1332_v55 = vadd.f32 %v1300_v49, %v1067_v52  ;;  %v1070_v56 = vadd.f32 %v1759_v53, %v1647_v50 }
 0x125   : > { %v1648_v57 = vpop.f32.mrb[20].mxu0 }
 0x126   : > { %1364 = vst [vmem:[%s2305_s24 + $0x40] sm:$0xff] %v1332_v55  ;;  %1269 = vst [vmem:[%s2299_s7 + $0x48] sm:$0xff] %v1070_v56  ;;  %v1333_v58 = vadd.f32 %v1301_v54, %v1070_v56  ;;  %v1760_v59 = vpop.f32.mrb[20].mxu1  ;;  %v1649_v60 = vpop.f32.mrb[21].mxu0 }
 0x127   : > { %v1650_v61 = vadd.f32 %v1649_v60, %v1648_v57  ;;  %v1761_v62 = vpop.f32.mrb[21].mxu1  ;;  %v1651_v63 = vpop.f32.mrb[22].mxu0  ;;  %v1308_v57 = vld [vmem:[%s2294_s27 + $0x80] sm:$0xff] }
 0x128   : > { %1365 = vst [vmem:[%s2305_s24 + $0x48] sm:$0xff] %v1333_v58  ;;  %v1762_v0 = vadd.f32 %v1761_v62, %v1760_v59  ;;  %v1763_v1 = vpop.f32.mrb[22].mxu1  ;;  %v1652_v2 = vpop.f32.mrb[23].mxu0  ;;  %v1309_v62 = vld [vmem:[%s2294_s27 + $0x88] sm:$0xff] }
 0x129   : > { %v1653_v4 = vadd.f32 %v1652_v2, %v1651_v63  ;;  %v1764_v5 = vpop.f32.mrb[23].mxu1 }
 0x12a   : > { %v1075_v6 = vadd.f32 %v1762_v0, %v1650_v61  ;;  %v1765_v7 = vadd.f32 %v1764_v5, %v1763_v1 }
 0x12c   : > { %1270 = vst [vmem:[%s2299_s7 + $0x50] sm:$0xff] %v1075_v6  ;;  %v1334_v9 = vadd.f32 %v1302_v3, %v1075_v6  ;;  %v1078_v10 = vadd.f32 %v1765_v7, %v1653_v4 }
 0x12d   : > { %v1654_v11 = vpop.f32.mrb[24].mxu0 }
 0x12e   : > { %1366 = vst [vmem:[%s2305_s24 + $0x50] sm:$0xff] %v1334_v9  ;;  %1271 = vst [vmem:[%s2299_s7 + $0x58] sm:$0xff] %v1078_v10  ;;  %v1335_v12 = vadd.f32 %v1303_v8, %v1078_v10  ;;  %v1766_v13 = vpop.f32.mrb[24].mxu1  ;;  %v1655_v14 = vpop.f32.mrb[25].mxu0 }
 0x12f   : > { %v1656_v15 = vadd.f32 %v1655_v14, %v1654_v11  ;;  %v1767_v16 = vpop.f32.mrb[25].mxu1  ;;  %v1657_v17 = vpop.f32.mrb[26].mxu0  ;;  %v1310_v11 = vld [vmem:[%s2294_s27 + $0x90] sm:$0xff] }
 0x130   : > { %1367 = vst [vmem:[%s2305_s24 + $0x58] sm:$0xff] %v1335_v12  ;;  %v1768_v18 = vadd.f32 %v1767_v16, %v1766_v13  ;;  %v1769_v19 = vpop.f32.mrb[26].mxu1  ;;  %v1658_v20 = vpop.f32.mrb[27].mxu0  ;;  %v1311_v16 = vld [vmem:[%s2294_s27 + $0x98] sm:$0xff] }
 0x131   : > { %v1659_v22 = vadd.f32 %v1658_v20, %v1657_v17  ;;  %v1770_v23 = vpop.f32.mrb[27].mxu1 }
 0x132   : > { %v1083_v24 = vadd.f32 %v1768_v18, %v1656_v15  ;;  %v1771_v25 = vadd.f32 %v1770_v23, %v1769_v19 }
 0x134   : > { %1272 = vst [vmem:[%s2299_s7 + $0x60] sm:$0xff] %v1083_v24  ;;  %v1336_v27 = vadd.f32 %v1304_v21, %v1083_v24  ;;  %v1086_v28 = vadd.f32 %v1771_v25, %v1659_v22 }
 0x135   : > { %v1660_v29 = vpop.f32.mrb[28].mxu0 }
 0x136   : > { %1368 = vst [vmem:[%s2305_s24 + $0x60] sm:$0xff] %v1336_v27  ;;  %1273 = vst [vmem:[%s2299_s7 + $0x68] sm:$0xff] %v1086_v28  ;;  %v1337_v30 = vadd.f32 %v1305_v26, %v1086_v28  ;;  %v1772_v31 = vpop.f32.mrb[28].mxu1  ;;  %v1661_v32 = vpop.f32.mrb[29].mxu0 }
 0x137   : > { %v1662_v33 = vadd.f32 %v1661_v32, %v1660_v29  ;;  %v1773_v34 = vpop.f32.mrb[29].mxu1  ;;  %v1663_v35 = vpop.f32.mrb[30].mxu0  ;;  %v1312_v29 = vld [vmem:[%s2294_s27 + $0xa0] sm:$0xff] }
 0x138   : > { %1369 = vst [vmem:[%s2305_s24 + $0x68] sm:$0xff] %v1337_v30  ;;  %v1774_v36 = vadd.f32 %v1773_v34, %v1772_v31  ;;  %v1775_v37 = vpop.f32.mrb[30].mxu1  ;;  %v1664_v38 = vpop.f32.mrb[31].mxu0  ;;  %v1313_v34 = vld [vmem:[%s2294_s27 + $0xa8] sm:$0xff] }
 0x139   : > { %v1665_v40 = vadd.f32 %v1664_v38, %v1663_v35  ;;  %v1776_v41 = vpop.f32.mrb[31].mxu1 }
 0x13a   : > { %v1091_v42 = vadd.f32 %v1774_v36, %v1662_v33  ;;  %v1777_v43 = vadd.f32 %v1776_v41, %v1775_v37 }
 0x13c   : > { %1274 = vst [vmem:[%s2299_s7 + $0x70] sm:$0xff] %v1091_v42  ;;  %v1338_v45 = vadd.f32 %v1306_v39, %v1091_v42  ;;  %v1094_v46 = vadd.f32 %v1777_v43, %v1665_v40 }
 0x13d   : > { %v1666_v47 = vpop.f32.mrb[32].mxu0 }
 0x13e   : > { %1370 = vst [vmem:[%s2305_s24 + $0x70] sm:$0xff] %v1338_v45  ;;  %1275 = vst [vmem:[%s2299_s7 + $0x78] sm:$0xff] %v1094_v46  ;;  %v1339_v48 = vadd.f32 %v1307_v44, %v1094_v46  ;;  %v1778_v49 = vpop.f32.mrb[32].mxu1  ;;  %v1667_v50 = vpop.f32.mrb[33].mxu0 }
 0x13f   : > { %v1668_v51 = vadd.f32 %v1667_v50, %v1666_v47  ;;  %v1779_v52 = vpop.f32.mrb[33].mxu1  ;;  %v1669_v53 = vpop.f32.mrb[34].mxu0  ;;  %v1314_v47 = vld [vmem:[%s2294_s27 + $0xb0] sm:$0xff] }
 0x140   : > { %1371 = vst [vmem:[%s2305_s24 + $0x78] sm:$0xff] %v1339_v48  ;;  %v1780_v54 = vadd.f32 %v1779_v52, %v1778_v49  ;;  %v1781_v55 = vpop.f32.mrb[34].mxu1  ;;  %v1670_v56 = vpop.f32.mrb[35].mxu0  ;;  %v1315_v52 = vld [vmem:[%s2294_s27 + $0xb8] sm:$0xff] }
 0x141   : > { %v1671_v58 = vadd.f32 %v1670_v56, %v1669_v53  ;;  %v1782_v59 = vpop.f32.mrb[35].mxu1 }
 0x142   : > { %v1099_v60 = vadd.f32 %v1780_v54, %v1668_v51  ;;  %v1783_v61 = vadd.f32 %v1782_v59, %v1781_v55 }
 0x144   : > { %1276 = vst [vmem:[%s2299_s7 + $0x80] sm:$0xff] %v1099_v60  ;;  %v1340_v63 = vadd.f32 %v1308_v57, %v1099_v60  ;;  %v1102_v0 = vadd.f32 %v1783_v61, %v1671_v58 }
 0x145   : > { %v1672_v1 = vpop.f32.mrb[36].mxu0 }
 0x146   : > { %1372 = vst [vmem:[%s2305_s24 + $0x80] sm:$0xff] %v1340_v63  ;;  %1277 = vst [vmem:[%s2299_s7 + $0x88] sm:$0xff] %v1102_v0  ;;  %v1341_v2 = vadd.f32 %v1309_v62, %v1102_v0  ;;  %v1784_v3 = vpop.f32.mrb[36].mxu1  ;;  %v1673_v4 = vpop.f32.mrb[37].mxu0 }
 0x147   : > { %v1674_v5 = vadd.f32 %v1673_v4, %v1672_v1  ;;  %v1785_v6 = vpop.f32.mrb[37].mxu1  ;;  %v1675_v7 = vpop.f32.mrb[38].mxu0  ;;  %v1316_v1 = vld [vmem:[%s2294_s27 + $0xc0] sm:$0xff] }
 0x148   : > { %1373 = vst [vmem:[%s2305_s24 + $0x88] sm:$0xff] %v1341_v2  ;;  %v1786_v8 = vadd.f32 %v1785_v6, %v1784_v3  ;;  %v1787_v9 = vpop.f32.mrb[38].mxu1  ;;  %v1676_v10 = vpop.f32.mrb[39].mxu0  ;;  %v1317_v6 = vld [vmem:[%s2294_s27 + $0xc8] sm:$0xff] }
 0x149   : > { %v1677_v12 = vadd.f32 %v1676_v10, %v1675_v7  ;;  %v1788_v13 = vpop.f32.mrb[39].mxu1 }
 0x14a   : > { %v1107_v14 = vadd.f32 %v1786_v8, %v1674_v5  ;;  %v1789_v15 = vadd.f32 %v1788_v13, %v1787_v9 }
 0x14c   : > { %1278 = vst [vmem:[%s2299_s7 + $0x90] sm:$0xff] %v1107_v14  ;;  %v1342_v17 = vadd.f32 %v1310_v11, %v1107_v14  ;;  %v1110_v18 = vadd.f32 %v1789_v15, %v1677_v12 }
 0x14d   : > { %v1678_v19 = vpop.f32.mrb[40].mxu0 }
 0x14e   : > { %1374 = vst [vmem:[%s2305_s24 + $0x90] sm:$0xff] %v1342_v17  ;;  %1279 = vst [vmem:[%s2299_s7 + $0x98] sm:$0xff] %v1110_v18  ;;  %v1343_v20 = vadd.f32 %v1311_v16, %v1110_v18  ;;  %v1790_v21 = vpop.f32.mrb[40].mxu1  ;;  %v1679_v22 = vpop.f32.mrb[41].mxu0 }
 0x14f   : > { %v1680_v23 = vadd.f32 %v1679_v22, %v1678_v19  ;;  %v1791_v24 = vpop.f32.mrb[41].mxu1  ;;  %v1681_v25 = vpop.f32.mrb[42].mxu0  ;;  %v1318_v19 = vld [vmem:[%s2294_s27 + $0xd0] sm:$0xff] }
 0x150   : > { %1375 = vst [vmem:[%s2305_s24 + $0x98] sm:$0xff] %v1343_v20  ;;  %v1792_v26 = vadd.f32 %v1791_v24, %v1790_v21  ;;  %v1793_v27 = vpop.f32.mrb[42].mxu1  ;;  %v1682_v28 = vpop.f32.mrb[43].mxu0  ;;  %v1319_v24 = vld [vmem:[%s2294_s27 + $0xd8] sm:$0xff] }
 0x151   : > { %v1683_v30 = vadd.f32 %v1682_v28, %v1681_v25  ;;  %v1794_v31 = vpop.f32.mrb[43].mxu1 }
 0x152   : > { %v1115_v32 = vadd.f32 %v1792_v26, %v1680_v23  ;;  %v1795_v33 = vadd.f32 %v1794_v31, %v1793_v27 }
 0x154   : > { %1280 = vst [vmem:[%s2299_s7 + $0xa0] sm:$0xff] %v1115_v32  ;;  %v1344_v35 = vadd.f32 %v1312_v29, %v1115_v32  ;;  %v1118_v36 = vadd.f32 %v1795_v33, %v1683_v30 }
 0x155   : > { %v1684_v37 = vpop.f32.mrb[44].mxu0 }
 0x156   : > { %1376 = vst [vmem:[%s2305_s24 + $0xa0] sm:$0xff] %v1344_v35  ;;  %1281 = vst [vmem:[%s2299_s7 + $0xa8] sm:$0xff] %v1118_v36  ;;  %v1345_v38 = vadd.f32 %v1313_v34, %v1118_v36  ;;  %v1796_v39 = vpop.f32.mrb[44].mxu1  ;;  %v1685_v40 = vpop.f32.mrb[45].mxu0 }
 0x157   : > { %v1686_v41 = vadd.f32 %v1685_v40, %v1684_v37  ;;  %v1797_v42 = vpop.f32.mrb[45].mxu1  ;;  %v1687_v43 = vpop.f32.mrb[46].mxu0  ;;  %v1320_v37 = vld [vmem:[%s2294_s27 + $0xe0] sm:$0xff] }
 0x158   : > { %1377 = vst [vmem:[%s2305_s24 + $0xa8] sm:$0xff] %v1345_v38  ;;  %v1798_v44 = vadd.f32 %v1797_v42, %v1796_v39  ;;  %v1799_v45 = vpop.f32.mrb[46].mxu1  ;;  %v1688_v46 = vpop.f32.mrb[47].mxu0  ;;  %v1321_v42 = vld [vmem:[%s2294_s27 + $0xe8] sm:$0xff] }
 0x159   : > { %v1689_v48 = vadd.f32 %v1688_v46, %v1687_v43  ;;  %v1800_v49 = vpop.f32.mrb[47].mxu1 }
 0x15a   : > { %v1123_v50 = vadd.f32 %v1798_v44, %v1686_v41  ;;  %v1801_v51 = vadd.f32 %v1800_v49, %v1799_v45 }
 0x15c   : > { %1282 = vst [vmem:[%s2299_s7 + $0xb0] sm:$0xff] %v1123_v50  ;;  %v1346_v53 = vadd.f32 %v1314_v47, %v1123_v50  ;;  %v1126_v54 = vadd.f32 %v1801_v51, %v1689_v48 }
 0x15d   : > { %v1690_v55 = vpop.f32.mrb[48].mxu0 }
 0x15e   : > { %1378 = vst [vmem:[%s2305_s24 + $0xb0] sm:$0xff] %v1346_v53  ;;  %1283 = vst [vmem:[%s2299_s7 + $0xb8] sm:$0xff] %v1126_v54  ;;  %v1347_v56 = vadd.f32 %v1315_v52, %v1126_v54  ;;  %v1802_v57 = vpop.f32.mrb[48].mxu1  ;;  %v1691_v58 = vpop.f32.mrb[49].mxu0 }
 0x15f   : > { %v1692_v59 = vadd.f32 %v1691_v58, %v1690_v55  ;;  %v1803_v60 = vpop.f32.mrb[49].mxu1  ;;  %v1693_v61 = vpop.f32.mrb[50].mxu0  ;;  %v1322_v55 = vld [vmem:[%s2294_s27 + $0xf0] sm:$0xff] }
 0x160   : > { %1379 = vst [vmem:[%s2305_s24 + $0xb8] sm:$0xff] %v1347_v56  ;;  %v1804_v62 = vadd.f32 %v1803_v60, %v1802_v57  ;;  %v1805_v63 = vpop.f32.mrb[50].mxu1  ;;  %v1694_v0 = vpop.f32.mrb[51].mxu0  ;;  %v1323_v60 = vld [vmem:[%s2294_s27 + $0xf8] sm:$0xff] }
 0x161   : > { %v1695_v2 = vadd.f32 %v1694_v0, %v1693_v61  ;;  %v1806_v3 = vpop.f32.mrb[51].mxu1 }
 0x162   : > { %v1131_v4 = vadd.f32 %v1804_v62, %v1692_v59  ;;  %v1807_v5 = vadd.f32 %v1806_v3, %v1805_v63 }
 0x164   : > { %1284 = vst [vmem:[%s2299_s7 + $0xc0] sm:$0xff] %v1131_v4  ;;  %v1348_v7 = vadd.f32 %v1316_v1, %v1131_v4  ;;  %v1134_v8 = vadd.f32 %v1807_v5, %v1695_v2 }
 0x165   : > { %v1696_v9 = vpop.f32.mrb[52].mxu0 }
 0x166   : > { %1380 = vst [vmem:[%s2305_s24 + $0xc0] sm:$0xff] %v1348_v7  ;;  %1285 = vst [vmem:[%s2299_s7 + $0xc8] sm:$0xff] %v1134_v8  ;;  %v1349_v10 = vadd.f32 %v1317_v6, %v1134_v8  ;;  %v1808_v11 = vpop.f32.mrb[52].mxu1  ;;  %v1697_v12 = vpop.f32.mrb[53].mxu0 }
 0x167   : > { %v1698_v13 = vadd.f32 %v1697_v12, %v1696_v9  ;;  %v1809_v14 = vpop.f32.mrb[53].mxu1  ;;  %v1699_v15 = vpop.f32.mrb[54].mxu0 }
 0x168   : > { %1381 = vst [vmem:[%s2305_s24 + $0xc8] sm:$0xff] %v1349_v10  ;;  %v1810_v16 = vadd.f32 %v1809_v14, %v1808_v11  ;;  %v1811_v17 = vpop.f32.mrb[54].mxu1  ;;  %v1700_v18 = vpop.f32.mrb[55].mxu0 }
 0x169   : > { %v1701_v20 = vadd.f32 %v1700_v18, %v1699_v15  ;;  %v1812_v21 = vpop.f32.mrb[55].mxu1 }
 0x16a   : > { %v1139_v22 = vadd.f32 %v1810_v16, %v1698_v13  ;;  %v1813_v23 = vadd.f32 %v1812_v21, %v1811_v17 }
 0x16c   : > { %1286 = vst [vmem:[%s2299_s7 + $0xd0] sm:$0xff] %v1139_v22  ;;  %v1350_v25 = vadd.f32 %v1318_v19, %v1139_v22  ;;  %v1142_v26 = vadd.f32 %v1813_v23, %v1701_v20 }
 0x16d   : > { %v1702_v27 = vpop.f32.mrb[56].mxu0 }
 0x16e   : > { %1382 = vst [vmem:[%s2305_s24 + $0xd0] sm:$0xff] %v1350_v25  ;;  %1287 = vst [vmem:[%s2299_s7 + $0xd8] sm:$0xff] %v1142_v26  ;;  %v1351_v28 = vadd.f32 %v1319_v24, %v1142_v26  ;;  %v1814_v29 = vpop.f32.mrb[56].mxu1  ;;  %v1703_v30 = vpop.f32.mrb[57].mxu0 }
 0x16f   : > { %v1704_v31 = vadd.f32 %v1703_v30, %v1702_v27  ;;  %v1815_v32 = vpop.f32.mrb[57].mxu1  ;;  %v1705_v33 = vpop.f32.mrb[58].mxu0 }
 0x170   : > { %1383 = vst [vmem:[%s2305_s24 + $0xd8] sm:$0xff] %v1351_v28  ;;  %v1816_v34 = vadd.f32 %v1815_v32, %v1814_v29  ;;  %v1817_v35 = vpop.f32.mrb[58].mxu1  ;;  %v1706_v36 = vpop.f32.mrb[59].mxu0 }
 0x171   : > { %v1707_v38 = vadd.f32 %v1706_v36, %v1705_v33  ;;  %v1818_v39 = vpop.f32.mrb[59].mxu1 }
 0x172   : > { %v1147_v40 = vadd.f32 %v1816_v34, %v1704_v31  ;;  %v1819_v41 = vadd.f32 %v1818_v39, %v1817_v35 }
 0x174   : > { %1288 = vst [vmem:[%s2299_s7 + $0xe0] sm:$0xff] %v1147_v40  ;;  %v1352_v43 = vadd.f32 %v1320_v37, %v1147_v40  ;;  %v1150_v44 = vadd.f32 %v1819_v41, %v1707_v38 }
 0x175   : > { %v1708_v45 = vpop.f32.mrb[60].mxu0 }
 0x176   : > { %1384 = vst [vmem:[%s2305_s24 + $0xe0] sm:$0xff] %v1352_v43  ;;  %1289 = vst [vmem:[%s2299_s7 + $0xe8] sm:$0xff] %v1150_v44  ;;  %v1353_v46 = vadd.f32 %v1321_v42, %v1150_v44  ;;  %v1820_v47 = vpop.f32.mrb[60].mxu1  ;;  %v1709_v48 = vpop.f32.mrb[61].mxu0 }
 0x177   : > { %v1710_v49 = vadd.f32 %v1709_v48, %v1708_v45  ;;  %v1821_v50 = vpop.f32.mrb[61].mxu1  ;;  %v1711_v51 = vpop.f32.mrb[62].mxu0 }
 0x178   : > { %1385 = vst [vmem:[%s2305_s24 + $0xe8] sm:$0xff] %v1353_v46  ;;  %v1822_v52 = vadd.f32 %v1821_v50, %v1820_v47  ;;  %v1823_v53 = vpop.f32.mrb[62].mxu1  ;;  %v1712_v54 = vpop.f32.mrb[63].mxu0 }
 0x179   : > { %v1713_v56 = vadd.f32 %v1712_v54, %v1711_v51  ;;  %v1824_v57 = vpop.f32.mrb[63].mxu1 }
 0x17a   : > { %v1155_v58 = vadd.f32 %v1822_v52, %v1710_v49  ;;  %v1825_v59 = vadd.f32 %v1824_v57, %v1823_v53 }
 0x17c   : > { %1290 = vst [vmem:[%s2299_s7 + $0xf0] sm:$0xff] %v1155_v58  ;;  %v1354_v61 = vadd.f32 %v1322_v55, %v1155_v58  ;;  %v1158_v62 = vadd.f32 %v1825_v59, %v1713_v56 }
 0x17e   : > { %1386 = vst [vmem:[%s2305_s24 + $0xf0] sm:$0xff] %v1354_v61  ;;  %1291 = vst [vmem:[%s2299_s7 + $0xf8] sm:$0xff] %v1158_v62  ;;  %v1355_v63 = vadd.f32 %v1323_v60, %v1158_v62 }
 0x180   : > { %1387 = vst [vmem:[%s2305_s24 + $0xf8] sm:$0xff] %v1355_v63 }
 0x181 PF: > { %s15_s17 = sadd.s32 1, %s1968_s17   ;;  %s2417_s15 = smov %s1964_s16 }
 0x182   : > { %p12_p5 = scmp.ge.s32.totalorder %s15_s17, 4   ;;  %s2418_s16 = smov %s2420_s18 }
 0x184   :  { %14 = sbr.rel (!%p12_p5) target bundleno = 2 (0x2), region = 88 }

// kernel: lightgcn_forward.5
= control target key start
LH: loop header
LB: loop body
LE: loop exit
PB: predicated region body
PF: predicated region fallthrough
CT: control target
= control target key end

     0   :  { %s152_s0 = inlined_call_operand.vmem [shape: f32[8,128], index: 0, kind: input, shape index: {}]   ;;  %s153_s1 = inlined_call_operand.vmem [shape: f32[8,128], index: 1, kind: input, shape index: {}]   ;;  %s154_s2 = inlined_call_operand.vmem [shape: f32[8,128], index: 2, kind: input, shape index: {}]   ;;  %s155_s3 = inlined_call_operand.hbm [shape: f32[1], index: 3, kind: output, shape index: {}]  }
   0x1   :  { %v21_v0 = vld [vmem:[%s152_s0] sm:$0xff] }
   0x2   :  { %v22_v1 = vld [vmem:[%s153_s1] sm:$0xff] }
   0x3   :  { %v26_v2 = vld [vmem:[%s154_s2] sm:$0xff]  ;;  %v23_v3 = vmul.f32 %v22_v1, %v21_v0 }
   0x4   :  { %8 = vsyncpa [#allocation4], 0  ;;  %v27_v4 = vmul.f32 %v26_v2, %v21_v0  ;;  %vm51_vm1 = vcmask 7168   ;;  %vm19_vm3 = vcmask 0   ;;  %v109_v25 = vmov 0.0   ;;  %s97_s20 = scalar_lea.hbm %s155_s3, 16 }
   0x5   :  { %24 = vadd.xlane.f32.xlu0 %v23_v3  ;;  %20 = vst.msk [vmem:[#allocation2] sm:$0x1] %vm19_vm3, %v109_v25  ;;  %p98_p0 = scmp.ne.s32.totalorder %s155_s3, %s97_s20  ;;  %p101_p1 = scmp.lt.u32.totalorder %s97_s20, %s155_s3 }
   0x7   :  { %p103_p2 = pnand %p101_p1, %p98_p0 }
   0x9   :  { %28 = vadd.xlane.f32.xlu0 %v27_v4 }
   0xc   :  { %v50_v33 = vld [vmem:[#allocation2] sm:$0x1] }
  0x92   :  { %v25_v5 = vpop.xlane.xlu0 %24 }
  0x96   :  { %v29_v6 = vpop.xlane.xlu0 %28 }
  0x97   :  { %v30_v7 = vsub.f32 %v29_v6, %v25_v5 }
  0x99   :  { %v32_v8 = vsub.f32 0.0, %v30_v7  ;;  %v31_v20 = vmax.f32 %v30_v7, 0.0 }
  0x9b   :  { %v35_v9 = vand.u32 2147483647, %v32_v8  ;;  %vm33_vm2 = vcmp.ne.f32.partialorder %v32_v8, %v32_v8 }
  0x9d   :  { %v36_v10 = vsub.f32 0.0, %v35_v9 }
  0x9f   :  { %v37_v11 = vmul.f32 1.442695, %v36_v10 }
  0xa1   :  { %93 = vpow2.f32 %v37_v11 }
  0xab   :  { %v94_v12 = vpop.eup %93 }
  0xac   :  { %v39_v13 = vadd.f32 1.0, %v94_v12  ;;  %v42_v14 = vmul.f32 -0.5, %v94_v12  ;;  %v45_v16 = vand.u32 2147483647, %v94_v12 }
  0xae   :  { %95 = vlog2.f32 %v39_v13  ;;  %v43_v15 = vadd.f32 1.0, %v42_v14  ;;  %vm46_vm0 = vcmp.lt.f32.partialorder %v45_v16, 0.0004427343 }
  0xb0   :  { %v44_v19 = vmul.f32 %v94_v12, %v43_v15 }
  0xb8   :  { %v96_v17 = vpop.eup %95 }
  0xb9   :  { %v41_v18 = vmul.f32 0.6931472, %v96_v17 }
  0xbb   :  { %v47_v21 = vsel %vm46_vm0, %v44_v19, %v41_v18 }
  0xbc   :  { %v48_v22 = vadd.f32 %v47_v21, %v31_v20 }
  0xbe   :  { %v49_v23 = vsel %vm33_vm2, %v30_v7, %v48_v22 }
  0xbf   :  { %v52_v24 = vsel %vm51_vm1, %v49_v23, 0.0 }
  0xc0   :  { %53 = vadd.xlane.f32.xlu1 %v52_v24 }
 0x14d   :  { %v54_v26 = vpop.xlane.xlu1 %53 }
 0x14e   :  { %v55_v27 = vrot.slane %v54_v26, 4 }
 0x150   :  { %v56_v28 = vadd.f32 %v55_v27, %v54_v26 }
 0x152   :  { %v57_v29 = vrot.slane %v56_v28, 2 }
 0x154   :  { %v58_v30 = vadd.f32 %v57_v29, %v56_v28 }
 0x156   :  { %v59_v31 = vrot.slane %v58_v30, 1 }
 0x158   :  { %v60_v32 = vadd.f32 %v59_v31, %v58_v30 }
 0x15a   :  { %87 = vpush %v60_v32 }
 0x18b   :  { %s88_s0 = spop %87 }
 0x18c   :  { %v62_v34 = vstv %s88_s0 }
 0x18d   :  { %v63_v35 = vadd.f32 %v62_v34, %v50_v33 }
 0x18f   :  { %65 = vst.msk [vmem:[#allocation2] sm:$0x1] %vm19_vm3, %v63_v35 }
 0x196   :  { %v69_v36 = vld [vmem:[#allocation2] sm:$0x1] }
 0x197   :  { %89 = vpush %v69_v36 }
 0x1c8   :  { %s90_s1 = spop %89 }
 0x1c9   :  { %s71_s2 = smul.f32 0.125, %s90_s1 }
 0x1cb   :  { %73 = sst [smem:[#allocation3]] %s71_s2 }
 0x1cc   :  { %106 = shalt.err (!%p103_p2)
}
 0x1cd   :  { %s110_s25 = smov [#allocation3]  }
 0x1ce   :  { %81 = dma.smem_to_hbm %s110_s25, 16, %s155_s3, [#allocation4]  }
 0x1cf   :  { %107 = dma.done.wait [#allocation4], 16  }
 0x1d0   :  { %108 = vsyncadd [#allocation4], 4294967280 }
 0x1d1   :  { %85 = sfence }
 0x1d2   :  { %86 = vsyncpa [#allocation4], 1 }

// kernel: lightgcn_forward.4
= control target key start
LH: loop header
LB: loop body
LE: loop exit
PB: predicated region body
PF: predicated region fallthrough
CT: control target
= control target key end

     0   :  { %10 = vsyncpa [#allocation4], 0  ;;  %s2729_s0 = inlined_call_operand.vmem [shape: f32[512,128], index: 0, kind: input, shape index: {}, may-alias: {0,4}]   ;;  %s2730_s1 = inlined_call_operand.vmem [shape: bf16[512,512], index: 1, kind: input, shape index: {}]   ;;  %s2731_s2 = inlined_call_operand.vmem [shape: f32[512,128], index: 2, kind: input, shape index: {}]   ;;  %s2732_s3 = inlined_call_operand.hbm [shape: f32[512,128], index: 3, kind: output, shape index: {0}]   ;;  %s2733_s4 = inlined_call_operand.vmem [shape: f32[512,128], index: 4, kind: output, shape index: {1}, may-alias: {0,4}]  }
   0x1   :  { %12 = vsyncpa [#allocation4 + $0x1], 0  ;;  %s2139_s15 = smov 0   ;;  %s2141_s16 = smov 0  }
   0x2   :  { %s2143_s17 = smov 0   ;;  %s2145_s18 = smov 0  }
   0x3   :  { %s2147_s19 = smov 0   ;;  %s2149_s20 = smov 0  }
   0x4 LB: > { %s1569_s21 = sadd.s32 4294967295, %s2109_s20   ;;  %s1570_s22 = sadd.s32 4294967294, %s2109_s20   ;;  %s2109_s20 = sphi %s2149_s20, %s18_s20   ;;  %s2105_s19 = sphi %s2147_s19, %s2741_s19   ;;  %s2101_s18 = sphi %s2145_s18, %s2740_s18   ;;  %s2097_s17 = sphi %s2143_s17, %s2739_s17   ;;  %s2093_s16 = sphi %s2141_s16, %s2738_s16   ;;  %s2089_s15 = sphi %s2139_s15, %s2737_s15  }
   0x5   : > { %s30_s23 = sadd.s32 1, %s2105_s19  ;;  %s117_s24 = sadd.s32 1, %s2097_s17 }
   0x6   : > { %p32_p0 = scmp.ge.s32.totalorder %s30_s23, 2  ;;  %p127_p1 = scmp.ne.s32.totalorder %s2097_s17, %s2093_s16 }
   0x7   : > { %p128_p2 = scmp.eq.s32.totalorder %s1569_s21, 1  ;;  %p133_p3 = scmp.ne.s32.totalorder %s2093_s16, %s2089_s15 }
   0x8   : > { %s2743_s23 = smov (%p32_p0, %s30_s23), 0  ;;  %p134_p5 = scmp.eq.s32.totalorder %s1570_s22, 1 }
   0x9   : > { %p2179_p4 = por %p128_p2, %p127_p1  ;;  %s114_s26 = ssub.s32 %s2105_s19, %s2743_s23 }
   0xa   : > { %p1574_p6 = scmp.ge.s32.totalorder %s2109_s20, 1  ;;  %p115_p7 = scmp.eq.s32.totalorder %s114_s26, 0 }
   0xb   : > { %p2186_p8 = por %p134_p5, %p133_p3  ;;  %p211_p9 = scmp.lt.s32.totalorder %s2109_s20, 3 }
   0xc   : > { %s2192_s28 = scalar_select %p115_p7, %s2097_s17, %s117_s24  }
   0xd   : > { %p212_p10 = pnand %p1574_p6, %p211_p9 }
   0xe   : > { %v437_v0 = vld [vmem:[%s2731_s2 + $0x80] sm:$0xff] (!%p212_p10)  ;;  %v438_v1 = vld [vmem:[%s2731_s2 + $0x88] sm:$0xff] (!%p212_p10)  ;;  %v439_v11 = vld [vmem:[%s2731_s2 + $0x90] sm:$0xff] (!%p212_p10)  ;;  %s1576_s7 = sshll.u32 (!%p212_p10), %s2101_s18, 5 }
   0xf   : > { %215 = sbr.rel (%p212_p10) target bundleno = 406 (0x196), region = 32  ;;  %v469_v2 = vld [vmem:[%s2731_s2 + $0x180] sm:$0xff] (!%p212_p10)  ;;  %v493_v3 = vpack.c.bf16 (!%p212_p10), %v438_v1, %v437_v0  ;;  %v470_v4 = vld [vmem:[%s2731_s2 + $0x188] sm:$0xff] (!%p212_p10)  ;;  %v440_v13 = vld [vmem:[%s2731_s2 + $0x98] sm:$0xff] (!%p212_p10)  ;;  %p2278_p11 = scmp.lt.s32.totalorder (!%p212_p10), %s1576_s7, 63 }
  0x10   : > { %v421_v5 = vld [vmem:[%s2731_s2] sm:$0xff] (!%p212_p10)  ;;  %v422_v6 = vld [vmem:[%s2731_s2 + $0x8] sm:$0xff] (!%p212_p10)  ;;  %v509_v7 = vpack.c.bf16 (!%p212_p10), %v470_v4, %v469_v2  ;;  %v471_v14 = vld [vmem:[%s2731_s2 + $0x190] sm:$0xff] (!%p212_p10)  ;;  %v494_v16 = vpack.c.bf16 (!%p212_p10), %v440_v13, %v439_v11 }
  0x11   : > { %v485_v8 = vpack.c.bf16 (!%p212_p10), %v422_v6, %v421_v5  ;;  %v453_v9 = vld [vmem:[%s2731_s2 + $0x100] sm:$0xff] (!%p212_p10)  ;;  %v454_v10 = vld [vmem:[%s2731_s2 + $0x108] sm:$0xff] (!%p212_p10)  ;;  %1654 = vmatprep.subr.bf16.mxu0 (!%p212_p10), %v493_v3  ;;  %v472_v15 = vld [vmem:[%s2731_s2 + $0x198] sm:$0xff] (!%p212_p10) }
  0x12   : > { %v501_v12 = vpack.c.bf16 (!%p212_p10), %v454_v10, %v453_v9  ;;  %1766 = vmatprep.subr.bf16.mxu1 (!%p212_p10), %v509_v7  ;;  %v510_v17 = vpack.c.bf16 (!%p212_p10), %v472_v15, %v471_v14  ;;  %v423_v18 = vld [vmem:[%s2731_s2 + $0x10] sm:$0xff] (!%p212_p10)  ;;  %v424_v19 = vld [vmem:[%s2731_s2 + $0x18] sm:$0xff] (!%p212_p10)  ;;  %v441_v23 = vld [vmem:[%s2731_s2 + $0xa0] sm:$0xff] (!%p212_p10) }
  0x13   : > { %1655 = vmatpush3.bf16.msra.mxu0 (!%p212_p10), %v485_v8  ;;  %v455_v20 = vld [vmem:[%s2731_s2 + $0x110] sm:$0xff] (!%p212_p10)  ;;  %v486_v21 = vpack.c.bf16 (!%p212_p10), %v424_v19, %v423_v18  ;;  %v456_v22 = vld [vmem:[%s2731_s2 + $0x118] sm:$0xff] (!%p212_p10)  ;;  %v442_v24 = vld [vmem:[%s2731_s2 + $0xa8] sm:$0xff] (!%p212_p10) }
  0x14   : > { %1767 = vmatpush3.bf16.msra.mxu1 (!%p212_p10), %v501_v12  ;;  %1656 = vmatprep.subr.bf16.mxu0 (!%p212_p10), %v494_v16  ;;  %v502_v25 = vpack.c.bf16 (!%p212_p10), %v456_v22, %v455_v20  ;;  %v495_v26 = vpack.c.bf16 (!%p212_p10), %v442_v24, %v441_v23  ;;  %v473_v27 = vld [vmem:[%s2731_s2 + $0x1a0] sm:$0xff] (!%p212_p10)  ;;  %v474_v28 = vld [vmem:[%s2731_s2 + $0x1a8] sm:$0xff] (!%p212_p10)  ;;  %v443_v35 = vld [vmem:[%s2731_s2 + $0xb0] sm:$0xff] (!%p212_p10) }
  0x15   : > { %1768 = vmatprep.subr.bf16.mxu1 (!%p212_p10), %v510_v17  ;;  %v425_v29 = vld [vmem:[%s2731_s2 + $0x20] sm:$0xff] (!%p212_p10)  ;;  %v511_v30 = vpack.c.bf16 (!%p212_p10), %v474_v28, %v473_v27  ;;  %v426_v31 = vld [vmem:[%s2731_s2 + $0x28] sm:$0xff] (!%p212_p10)  ;;  %v444_v36 = vld [vmem:[%s2731_s2 + $0xb8] sm:$0xff] (!%p212_p10) }
  0x16   : > { %v457_v32 = vld [vmem:[%s2731_s2 + $0x120] sm:$0xff]  ;;  %v458_v33 = vld [vmem:[%s2731_s2 + $0x128] sm:$0xff]  ;;  %v487_v34 = vpack.c.bf16 %v426_v31, %v425_v29  ;;  %v475_v37 = vld [vmem:[%s2731_s2 + $0x1b0] sm:$0xff]  ;;  %v496_v39 = vpack.c.bf16 %v444_v36, %v443_v35  ;;  %s2745_s7 = smov (!%p2278_p11, %s1576_s7), 63 }
  0x17   : > { %1657 = vmatpush3.bf16.msra.mxu0 %v486_v21  ;;  %v503_v38 = vpack.c.bf16 %v458_v33, %v457_v32  ;;  %v476_v40 = vld [vmem:[%s2731_s2 + $0x1b8] sm:$0xff]  ;;  %v427_v41 = vld [vmem:[%s2731_s2 + $0x30] sm:$0xff]  ;;  %v445_v46 = vld [vmem:[%s2731_s2 + $0xc0] sm:$0xff]  ;;  %s1652_s29 = sshll.u32 %s2745_s7, 4  ;;  %s1577_s26 = sshll.u32 %s2745_s7, 3 }
  0x18   : > { %1769 = vmatpush3.bf16.msra.mxu1 %v502_v25  ;;  %1658 = vmatprep.subr.bf16.mxu0 %v495_v26  ;;  %v428_v42 = vld [vmem:[%s2731_s2 + $0x38] sm:$0xff]  ;;  %v512_v43 = vpack.c.bf16 %v476_v40, %v475_v37  ;;  %v459_v44 = vld [vmem:[%s2731_s2 + $0x130] sm:$0xff]  ;;  %v446_v47 = vld [vmem:[%s2731_s2 + $0xc8] sm:$0xff]  ;;  %s2373_s10 = scalar_lea.vmem %s2730_s1, %s1652_s29  ;;  %s247_s29 = sand.u32 1, %s2093_s16  }
  0x19   : > { %1770 = vmatprep.subr.bf16.mxu1 %v511_v30  ;;  %v460_v45 = vld [vmem:[%s2731_s2 + $0x138] sm:$0xff]  ;;  %v477_v48 = vld [vmem:[%s2731_s2 + $0x1c0] sm:$0xff]  ;;  %v478_v49 = vld [vmem:[%s2731_s2 + $0x1c8] sm:$0xff]  ;;  %v488_v50 = vpack.c.bf16 %v428_v42, %v427_v41  ;;  %v497_v52 = vpack.c.bf16 %v446_v47, %v445_v46  ;;  %s2473_s30 = sshll.u32 %s247_s29, 8  ;;  %s2480_s6 = scalar_lea.vmem %s2729_s0, %s1577_s26 }
  0x1a   : > { %v504_v51 = vpack.c.bf16 %v460_v45, %v459_v44  ;;  %v429_v53 = vld [vmem:[%s2731_s2 + $0x40] sm:$0xff]  ;;  %v430_v54 = vld [vmem:[%s2731_s2 + $0x48] sm:$0xff]  ;;  %v513_v56 = vpack.c.bf16 %v478_v49, %v477_v48  ;;  %v447_v58 = vld [vmem:[%s2731_s2 + $0xd0] sm:$0xff]  ;;  %s2570_s12 = scalar_lea.vmem %s2733_s4, %s1577_s26  ;;  %s1653_s7 = sshll.u32 %s2101_s18, 12 }
  0x1b   : > { %1659 = vmatpush3.bf16.msra.mxu0 %v487_v34  ;;  %v461_v55 = vld [vmem:[%s2731_s2 + $0x140] sm:$0xff]  ;;  %v462_v57 = vld [vmem:[%s2731_s2 + $0x148] sm:$0xff]  ;;  %v448_v59 = vld [vmem:[%s2731_s2 + $0xd8] sm:$0xff]  ;;  %v489_v62 = vpack.c.bf16 %v430_v54, %v429_v53  ;;  %s2671_s22 = scalar_lea.hbm %s2732_s3, %s1653_s7  ;;  %s2681_s18 = scalar_lea.sflag [#allocation4], %s247_s29 }
  0x1c   : > { %1771 = vmatpush3.bf16.msra.mxu1 %v503_v38  ;;  %1660 = vmatprep.subr.bf16.mxu0 %v496_v39  ;;  %v479_v60 = vld [vmem:[%s2731_s2 + $0x1d0] sm:$0xff]  ;;  %v480_v61 = vld [vmem:[%s2731_s2 + $0x1d8] sm:$0xff]  ;;  %v505_v0 = vpack.c.bf16 %v462_v57, %v461_v55  ;;  %v498_v1 = vpack.c.bf16 %v448_v59, %v447_v58  ;;  %v449_v6 = vld [vmem:[%s2731_s2 + $0xe0] sm:$0xff]  ;;  %s2111_s26 = smov [#allocation3]  }
  0x1d   : > { %1772 = vmatprep.subr.bf16.mxu1 %v512_v43  ;;  %v431_v63 = vld [vmem:[%s2731_s2 + $0x50] sm:$0xff]  ;;  %v432_v2 = vld [vmem:[%s2731_s2 + $0x58] sm:$0xff]  ;;  %v514_v5 = vpack.c.bf16 %v480_v61, %v479_v60  ;;  %v450_v7 = vld [vmem:[%s2731_s2 + $0xe8] sm:$0xff] }
  0x1e   : > { %v463_v3 = vld [vmem:[%s2731_s2 + $0x150] sm:$0xff]  ;;  %v464_v4 = vld [vmem:[%s2731_s2 + $0x158] sm:$0xff]  ;;  %v481_v8 = vld [vmem:[%s2731_s2 + $0x1e0] sm:$0xff]  ;;  %v490_v12 = vpack.c.bf16 %v432_v2, %v431_v63  ;;  %v499_v17 = vpack.c.bf16 %v450_v7, %v449_v6 }
  0x1f   : > { %1661 = vmatpush3.bf16.msra.mxu0 %v488_v50  ;;  %v482_v9 = vld [vmem:[%s2731_s2 + $0x1e8] sm:$0xff]  ;;  %v433_v10 = vld [vmem:[%s2731_s2 + $0x60] sm:$0xff]  ;;  %v451_v15 = vld [vmem:[%s2731_s2 + $0xf0] sm:$0xff]  ;;  %v506_v16 = vpack.c.bf16 %v464_v4, %v463_v3 }
  0x20   : > { %1773 = vmatpush3.bf16.msra.mxu1 %v504_v51  ;;  %1662 = vmatprep.subr.bf16.mxu0 %v497_v52  ;;  %v434_v11 = vld [vmem:[%s2731_s2 + $0x68] sm:$0xff]  ;;  %v465_v13 = vld [vmem:[%s2731_s2 + $0x160] sm:$0xff]  ;;  %v452_v18 = vld [vmem:[%s2731_s2 + $0xf8] sm:$0xff]  ;;  %v515_v19 = vpack.c.bf16 %v482_v9, %v481_v8 }
  0x21   : > { %1774 = vmatprep.subr.bf16.mxu1 %v513_v56  ;;  %v466_v14 = vld [vmem:[%s2731_s2 + $0x168] sm:$0xff]  ;;  %v483_v20 = vld [vmem:[%s2731_s2 + $0x1f0] sm:$0xff]  ;;  %v484_v22 = vld [vmem:[%s2731_s2 + $0x1f8] sm:$0xff]  ;;  %v491_v24 = vpack.c.bf16 %v434_v11, %v433_v10  ;;  %v500_v27 = vpack.c.bf16 %v452_v18, %v451_v15 }
  0x22   : > { %v1937_v21 = vld [vmem:[%s2373_s10 + $0x4] ss:$16 sps:$4 sm:$0xff]   ;;  %v1940_v23 = vld [vmem:[%s2373_s10 + $0xc] ss:$16 sps:$4 sm:$0xff]   ;;  %v507_v26 = vpack.c.bf16 %v466_v14, %v465_v13  ;;  %v516_v29 = vpack.c.bf16 %v484_v22, %v483_v20  ;;  %v1935_v34 = vld [vmem:[%s2373_s10] ss:$16 sps:$4 sm:$0xff]  }
  0x23   : > { %1663 = vmatpush3.bf16.msra.mxu0 %v489_v62  ;;  %v435_v25 = vld [vmem:[%s2731_s2 + $0x70] sm:$0xff]  ;;  %869 = vmatprep.mubr.bf16.mxu0 %v1937_v21  ;;  %v436_v28 = vld [vmem:[%s2731_s2 + $0x78] sm:$0xff] }
  0x24   : > { %1775 = vmatpush3.bf16.msra.mxu1 %v505_v0  ;;  %1664 = vmatprep.subr.bf16.mxu0 %v498_v1  ;;  %v467_v30 = vld [vmem:[%s2731_s2 + $0x170] sm:$0xff]  ;;  %v468_v31 = vld [vmem:[%s2731_s2 + $0x178] sm:$0xff]  ;;  %v492_v32 = vpack.c.bf16 %v436_v28, %v435_v25 }
  0x25   : > { %1776 = vmatprep.subr.bf16.mxu1 %v514_v5  ;;  %1030 = vmatprep.mubr.bf16.mxu1 %v1940_v23  ;;  %v508_v33 = vpack.c.bf16 %v468_v31, %v467_v30  ;;  %v1938_v35 = vld [vmem:[%s2373_s10 + $0x8] ss:$16 sps:$4 sm:$0xff]   ;;  %v1941_v36 = vld [vmem:[%s2373_s10 + $0x24] ss:$16 sps:$4 sm:$0xff]   ;;  %v1943_v37 = vld [vmem:[%s2373_s10 + $0x2c] ss:$16 sps:$4 sm:$0xff]  }
  0x26   : > { %v1945_v38 = vld [vmem:[%s2373_s10 + $0x20] ss:$16 sps:$4 sm:$0xff]   ;;  %v1946_v39 = vld [vmem:[%s2373_s10 + $0x28] ss:$16 sps:$4 sm:$0xff]   ;;  %v1947_v40 = vld [vmem:[%s2373_s10 + $0x44] ss:$16 sps:$4 sm:$0xff]  }
  0x27   : > { %1665 = vmatpush3.bf16.msra.mxu0 %v490_v12  ;;  %v1949_v41 = vld [vmem:[%s2373_s10 + $0x4c] ss:$16 sps:$4 sm:$0xff]   ;;  %v1951_v42 = vld [vmem:[%s2373_s10 + $0x40] ss:$16 sps:$4 sm:$0xff]   ;;  %v1952_v43 = vld [vmem:[%s2373_s10 + $0x48] ss:$16 sps:$4 sm:$0xff]  }
  0x28   : > { %1777 = vmatpush3.bf16.msra.mxu1 %v506_v16  ;;  %1666 = vmatprep.subr.bf16.mxu0 %v499_v17  ;;  %v1953_v44 = vld [vmem:[%s2373_s10 + $0x64] ss:$16 sps:$4 sm:$0xff]   ;;  %v1955_v45 = vld [vmem:[%s2373_s10 + $0x6c] ss:$16 sps:$4 sm:$0xff]   ;;  %v1957_v46 = vld [vmem:[%s2373_s10 + $0x60] ss:$16 sps:$4 sm:$0xff]  }
  0x29   : > { %1778 = vmatprep.subr.bf16.mxu1 %v515_v19  ;;  %v1958_v47 = vld [vmem:[%s2373_s10 + $0x68] ss:$16 sps:$4 sm:$0xff]   ;;  %v1959_v48 = vld [vmem:[%s2373_s10 + $0x84] ss:$16 sps:$4 sm:$0xff]   ;;  %v1961_v49 = vld [vmem:[%s2373_s10 + $0x8c] ss:$16 sps:$4 sm:$0xff]  }
  0x2a   : > { %v1963_v50 = vld [vmem:[%s2373_s10 + $0x80] ss:$16 sps:$4 sm:$0xff]   ;;  %v1964_v51 = vld [vmem:[%s2373_s10 + $0x88] ss:$16 sps:$4 sm:$0xff]   ;;  %v1965_v52 = vld [vmem:[%s2373_s10 + $0xa4] ss:$16 sps:$4 sm:$0xff]  }
  0x2b   : > { %1667 = vmatpush3.bf16.msra.mxu0 %v491_v24  ;;  %v1967_v53 = vld [vmem:[%s2373_s10 + $0xac] ss:$16 sps:$4 sm:$0xff]   ;;  %v1969_v54 = vld [vmem:[%s2373_s10 + $0xa0] ss:$16 sps:$4 sm:$0xff]   ;;  %v1970_v55 = vld [vmem:[%s2373_s10 + $0xa8] ss:$16 sps:$4 sm:$0xff]  }
  0x2c   : > { %1779 = vmatpush3.bf16.msra.mxu1 %v507_v26  ;;  %1668 = vmatprep.subr.bf16.mxu0 %v500_v27  ;;  %v1971_v56 = vld [vmem:[%s2373_s10 + $0xc4] ss:$16 sps:$4 sm:$0xff]   ;;  %v1973_v57 = vld [vmem:[%s2373_s10 + $0xcc] ss:$16 sps:$4 sm:$0xff]   ;;  %v1975_v58 = vld [vmem:[%s2373_s10 + $0xc0] ss:$16 sps:$4 sm:$0xff]  }
  0x2d   : > { %1780 = vmatprep.subr.bf16.mxu1 %v516_v29  ;;  %v1976_v59 = vld [vmem:[%s2373_s10 + $0xc8] ss:$16 sps:$4 sm:$0xff]   ;;  %v1977_v60 = vld [vmem:[%s2373_s10 + $0xe4] ss:$16 sps:$4 sm:$0xff]   ;;  %v1979_v61 = vld [vmem:[%s2373_s10 + $0xec] ss:$16 sps:$4 sm:$0xff]  }
  0x2e   : > { %v1981_v62 = vld [vmem:[%s2373_s10 + $0xe0] ss:$16 sps:$4 sm:$0xff]   ;;  %v1982_v63 = vld [vmem:[%s2373_s10 + $0xe8] ss:$16 sps:$4 sm:$0xff]   ;;  %v1983_v0 = vld [vmem:[%s2373_s10 + $0x104] ss:$16 sps:$4 sm:$0xff]  }
  0x2f   : > { %1669 = vmatpush3.bf16.msra.mxu0 %v492_v32  ;;  %v1985_v1 = vld [vmem:[%s2373_s10 + $0x10c] ss:$16 sps:$4 sm:$0xff]   ;;  %v1987_v2 = vld [vmem:[%s2373_s10 + $0x100] ss:$16 sps:$4 sm:$0xff]   ;;  %v1988_v3 = vld [vmem:[%s2373_s10 + $0x108] ss:$16 sps:$4 sm:$0xff]  }
  0x30   : > { %1781 = vmatpush3.bf16.msra.mxu1 %v508_v33  ;;  %v1989_v4 = vld [vmem:[%s2373_s10 + $0x124] ss:$16 sps:$4 sm:$0xff]   ;;  %v1991_v5 = vld [vmem:[%s2373_s10 + $0x12c] ss:$16 sps:$4 sm:$0xff]   ;;  %v1993_v6 = vld [vmem:[%s2373_s10 + $0x120] ss:$16 sps:$4 sm:$0xff]  }
  0x31   : > { %v1994_v7 = vld [vmem:[%s2373_s10 + $0x128] ss:$16 sps:$4 sm:$0xff]   ;;  %v1995_v8 = vld [vmem:[%s2373_s10 + $0x144] ss:$16 sps:$4 sm:$0xff]   ;;  %v1997_v9 = vld [vmem:[%s2373_s10 + $0x14c] ss:$16 sps:$4 sm:$0xff]  }
  0x32   : > { %870 = vmatmul.mubr.bf16.vlgmr.msra.gmra.mrb[0].mxu0 %v1935_v34  ;;  %v1999_v10 = vld [vmem:[%s2373_s10 + $0x140] ss:$16 sps:$4 sm:$0xff]   ;;  %v2000_v11 = vld [vmem:[%s2373_s10 + $0x148] ss:$16 sps:$4 sm:$0xff]   ;;  %v2001_v12 = vld [vmem:[%s2373_s10 + $0x164] ss:$16 sps:$4 sm:$0xff]  }
  0x33   : > { %1031 = vmatmul.mubr.bf16.vlgmr.msra.gmra.mrb[0].mxu1 %v1938_v35  ;;  %877 = vmatprep.mubr.bf16.mxu0 %v1941_v36  ;;  %v2003_v13 = vld [vmem:[%s2373_s10 + $0x16c] ss:$16 sps:$4 sm:$0xff]   ;;  %v2005_v14 = vld [vmem:[%s2373_s10 + $0x160] ss:$16 sps:$4 sm:$0xff]   ;;  %v2006_v15 = vld [vmem:[%s2373_s10 + $0x168] ss:$16 sps:$4 sm:$0xff]  }
  0x34   : > { %1038 = vmatprep.mubr.bf16.mxu1 %v1943_v37  ;;  %v2007_v16 = vld [vmem:[%s2373_s10 + $0x184] ss:$16 sps:$4 sm:$0xff]   ;;  %v2009_v17 = vld [vmem:[%s2373_s10 + $0x18c] ss:$16 sps:$4 sm:$0xff]   ;;  %v2011_v18 = vld [vmem:[%s2373_s10 + $0x180] ss:$16 sps:$4 sm:$0xff]  }
  0x35   : > { %v2012_v19 = vld [vmem:[%s2373_s10 + $0x188] ss:$16 sps:$4 sm:$0xff]   ;;  %v2013_v20 = vld [vmem:[%s2373_s10 + $0x1a4] ss:$16 sps:$4 sm:$0xff]   ;;  %v2015_v21 = vld [vmem:[%s2373_s10 + $0x1ac] ss:$16 sps:$4 sm:$0xff]  }
  0x36   : > { %v2017_v22 = vld [vmem:[%s2373_s10 + $0x1a0] ss:$16 sps:$4 sm:$0xff]   ;;  %v2018_v23 = vld [vmem:[%s2373_s10 + $0x1a8] ss:$16 sps:$4 sm:$0xff]   ;;  %v2019_v24 = vld [vmem:[%s2373_s10 + $0x1c4] ss:$16 sps:$4 sm:$0xff]  }
  0x37   : > { %v2021_v25 = vld [vmem:[%s2373_s10 + $0x1cc] ss:$16 sps:$4 sm:$0xff]   ;;  %v2023_v26 = vld [vmem:[%s2373_s10 + $0x1c0] ss:$16 sps:$4 sm:$0xff]   ;;  %v2024_v27 = vld [vmem:[%s2373_s10 + $0x1c8] ss:$16 sps:$4 sm:$0xff]  }
  0x38   : > { %v2025_v28 = vld [vmem:[%s2373_s10 + $0x1e4] ss:$16 sps:$4 sm:$0xff]   ;;  %v2027_v29 = vld [vmem:[%s2373_s10 + $0x1ec] ss:$16 sps:$4 sm:$0xff]   ;;  %v2029_v30 = vld [vmem:[%s2373_s10 + $0x1e0] ss:$16 sps:$4 sm:$0xff]  }
  0x39   : > { %v2030_v31 = vld [vmem:[%s2373_s10 + $0x1e8] ss:$16 sps:$4 sm:$0xff]   ;;  %s2553_s10 = scalar_lea.vmem [#allocation3], %s2473_s30  ;;  %s2035_s30 = sshll.u32 %s2111_s26, 4  ;;  %s2036_s30 = int_to_ptr.vmem [resolvable:$false] %s2035_s30 }
  0x3a   : > { %878 = vmatmul.mubr.bf16.gmra.mrb[4].mxu0 %v1945_v38  ;;  %s1437_s13 = sshll.u32 %s2553_s10, 4  ;;  %s2037_s5 = scalar_lea.vmem %s2036_s30, 8192  ;;  %s2673_s13 = int_to_ptr.vmem [resolvable:$true] %s1437_s13 }
  0x3b   : > { %1039 = vmatmul.mubr.bf16.gmra.mrb[4].mxu1 %v1946_v39  ;;  %885 = vmatprep.mubr.bf16.mxu0 %v1947_v40  ;;  %s2031_s24 = scalar_lea.vmem %s2673_s13, 4096  ;;  %p2038_p1 = scmp.lt.s32.totalorder %s2673_s13, %s2036_s30 }
  0x3c   : > { %1046 = vmatprep.mubr.bf16.mxu1 %v1949_v41  ;;  %v1290_v41 = vld [vmem:[%s2480_s6] sm:$0xff]  ;;  %p2032_p12 = scmp.ne.s32.totalorder %s2673_s13, %s2031_s24  ;;  %p2039_p2 = scmp.lt.s32.totalorder %s2037_s5, %s2031_s24 }
  0x3e   : > { %p2033_p13 = pnand %p2032_p12, %p2179_p4  ;;  %p2040_p3 = por %p2039_p2, %p2038_p1 }
  0x40   : > { %p2034_p0 = pneg %p2033_p13 }
  0x42   : > { %886 = vmatmul.mubr.bf16.gmra.mrb[8].mxu0 %v1951_v42  ;;  %p2041_p5 = pnand %p2040_p3, %p2034_p0 }
  0x43   : > { %1047 = vmatmul.mubr.bf16.gmra.mrb[8].mxu1 %v1952_v43  ;;  %893 = vmatprep.mubr.bf16.mxu0 %v1953_v44 }
  0x44   : > { %1054 = vmatprep.mubr.bf16.mxu1 %v1955_v45 }
  0x4a   : > { %894 = vmatmul.mubr.bf16.gmra.mrb[12].mxu0 %v1957_v46  ;;  %v1291_v46 = vld [vmem:[%s2480_s6 + $0x8] sm:$0xff] }
  0x4b   : > { %1055 = vmatmul.mubr.bf16.gmra.mrb[12].mxu1 %v1958_v47  ;;  %901 = vmatprep.mubr.bf16.mxu0 %v1959_v48  ;;  %v1292_v47 = vld [vmem:[%s2480_s6 + $0x10] sm:$0xff]  ;;  %v1293_v48 = vld [vmem:[%s2480_s6 + $0x18] sm:$0xff] }
  0x4c   : > { %1062 = vmatprep.mubr.bf16.mxu1 %v1961_v49  ;;  %v2487_v49 = vld [vmem:[%s2480_s6 + $0x20] sm:$0xff] }
  0x52   : > { %902 = vmatmul.mubr.bf16.gmra.mrb[16].mxu0 %v1963_v50  ;;  %v2490_v50 = vld [vmem:[%s2480_s6 + $0x28] sm:$0xff] }
  0x53   : > { %1063 = vmatmul.mubr.bf16.gmra.mrb[16].mxu1 %v1964_v51  ;;  %909 = vmatprep.mubr.bf16.mxu0 %v1965_v52  ;;  %v2493_v51 = vld [vmem:[%s2480_s6 + $0x30] sm:$0xff]  ;;  %v2496_v52 = vld [vmem:[%s2480_s6 + $0x38] sm:$0xff] }
  0x54   : > { %1070 = vmatprep.mubr.bf16.mxu1 %v1967_v53  ;;  %v2499_v53 = vld [vmem:[%s2480_s6 + $0x40] sm:$0xff] }
  0x5a   : > { %910 = vmatmul.mubr.bf16.gmra.mrb[20].mxu0 %v1969_v54  ;;  %v2502_v54 = vld [vmem:[%s2480_s6 + $0x48] sm:$0xff] }
  0x5b   : > { %1071 = vmatmul.mubr.bf16.gmra.mrb[20].mxu1 %v1970_v55  ;;  %917 = vmatprep.mubr.bf16.mxu0 %v1971_v56  ;;  %v2505_v55 = vld [vmem:[%s2480_s6 + $0x50] sm:$0xff]  ;;  %v2508_v56 = vld [vmem:[%s2480_s6 + $0x58] sm:$0xff] }
  0x5c   : > { %1078 = vmatprep.mubr.bf16.mxu1 %v1973_v57  ;;  %v2511_v57 = vld [vmem:[%s2480_s6 + $0x60] sm:$0xff] }
  0x62   : > { %918 = vmatmul.mubr.bf16.gmra.mrb[24].mxu0 %v1975_v58  ;;  %v2514_v58 = vld [vmem:[%s2480_s6 + $0x68] sm:$0xff] }
  0x63   : > { %1079 = vmatmul.mubr.bf16.gmra.mrb[24].mxu1 %v1976_v59  ;;  %925 = vmatprep.mubr.bf16.mxu0 %v1977_v60  ;;  %v2517_v59 = vld [vmem:[%s2480_s6 + $0x70] sm:$0xff]  ;;  %v2520_v60 = vld [vmem:[%s2480_s6 + $0x78] sm:$0xff] }
  0x64   : > { %1086 = vmatprep.mubr.bf16.mxu1 %v1979_v61  ;;  %v2523_v61 = vld [vmem:[%s2480_s6 + $0x80] sm:$0xff] }
  0x6a   : > { %926 = vmatmul.mubr.bf16.gmra.mrb[28].mxu0 %v1981_v62  ;;  %v2526_v62 = vld [vmem:[%s2480_s6 + $0x88] sm:$0xff] }
  0x6b   : > { %1087 = vmatmul.mubr.bf16.gmra.mrb[28].mxu1 %v1982_v63  ;;  %933 = vmatprep.mubr.bf16.mxu0 %v1983_v0  ;;  %v2529_v63 = vld [vmem:[%s2480_s6 + $0x90] sm:$0xff]  ;;  %v2532_v0 = vld [vmem:[%s2480_s6 + $0x98] sm:$0xff] }
  0x6c   : > { %1094 = vmatprep.mubr.bf16.mxu1 %v1985_v1  ;;  %v2535_v1 = vld [vmem:[%s2480_s6 + $0xa0] sm:$0xff] }
  0x72   : > { %934 = vmatmul.mubr.bf16.gmra.mrb[32].mxu0 %v1987_v2  ;;  %v2538_v2 = vld [vmem:[%s2480_s6 + $0xa8] sm:$0xff] }
  0x73   : > { %1095 = vmatmul.mubr.bf16.gmra.mrb[32].mxu1 %v1988_v3  ;;  %941 = vmatprep.mubr.bf16.mxu0 %v1989_v4  ;;  %v2541_v3 = vld [vmem:[%s2480_s6 + $0xb0] sm:$0xff]  ;;  %v2544_v4 = vld [vmem:[%s2480_s6 + $0xb8] sm:$0xff] }
  0x74   : > { %1102 = vmatprep.mubr.bf16.mxu1 %v1991_v5  ;;  %v2547_v5 = vld [vmem:[%s2480_s6 + $0xc0] sm:$0xff] }
  0x7a   : > { %942 = vmatmul.mubr.bf16.gmra.mrb[36].mxu0 %v1993_v6  ;;  %v2550_v6 = vld [vmem:[%s2480_s6 + $0xc8] sm:$0xff] }
  0x7b   : > { %1103 = vmatmul.mubr.bf16.gmra.mrb[36].mxu1 %v1994_v7  ;;  %949 = vmatprep.mubr.bf16.mxu0 %v1995_v8 }
  0x7c   : > { %1110 = vmatprep.mubr.bf16.mxu1 %v1997_v9  ;;  %v2557_v9 = vld [vmem:[%s2480_s6 + $0xd0] sm:$0xff] }
  0x82   : > { %950 = vmatmul.mubr.bf16.gmra.mrb[40].mxu0 %v1999_v10  ;;  %v2560_v10 = vld [vmem:[%s2480_s6 + $0xd8] sm:$0xff] }
  0x83   : > { %1111 = vmatmul.mubr.bf16.gmra.mrb[40].mxu1 %v2000_v11  ;;  %957 = vmatprep.mubr.bf16.mxu0 %v2001_v12  ;;  %v2563_v11 = vld [vmem:[%s2480_s6 + $0xe0] sm:$0xff] }
  0x84   : > { %1118 = vmatprep.mubr.bf16.mxu1 %v2003_v13  ;;  %v2573_v13 = vld [vmem:[%s2480_s6 + $0xe8] sm:$0xff] }
  0x8a   : > { %958 = vmatmul.mubr.bf16.gmra.mrb[44].mxu0 %v2005_v14  ;;  %v2576_v14 = vld [vmem:[%s2480_s6 + $0xf0] sm:$0xff] }
  0x8b   : > { %1119 = vmatmul.mubr.bf16.gmra.mrb[44].mxu1 %v2006_v15  ;;  %965 = vmatprep.mubr.bf16.mxu0 %v2007_v16  ;;  %v2579_v15 = vld [vmem:[%s2480_s6 + $0xf8] sm:$0xff] }
  0x8c   : > { %1126 = vmatprep.mubr.bf16.mxu1 %v2009_v17 }
  0x92   : > { %966 = vmatmul.mubr.bf16.gmra.mrb[48].mxu0 %v2011_v18 }
  0x93   : > { %1127 = vmatmul.mubr.bf16.gmra.mrb[48].mxu1 %v2012_v19  ;;  %973 = vmatprep.mubr.bf16.mxu0 %v2013_v20 }
  0x94   : > { %1134 = vmatprep.mubr.bf16.mxu1 %v2015_v21 }
  0x9a   : > { %974 = vmatmul.mubr.bf16.gmra.mrb[52].mxu0 %v2017_v22 }
  0x9b   : > { %1135 = vmatmul.mubr.bf16.gmra.mrb[52].mxu1 %v2018_v23  ;;  %981 = vmatprep.mubr.bf16.mxu0 %v2019_v24 }
  0x9c   : > { %1142 = vmatprep.mubr.bf16.mxu1 %v2021_v25 }
  0xa2   : > { %982 = vmatmul.mubr.bf16.gmra.mrb[56].mxu0 %v2023_v26 }
  0xa3   : > { %1143 = vmatmul.mubr.bf16.gmra.mrb[56].mxu1 %v2024_v27  ;;  %989 = vmatprep.mubr.bf16.mxu0 %v2025_v28 }
  0xa4   : > { %1150 = vmatprep.mubr.bf16.mxu1 %v2027_v29 }
  0xaa   : > { %990 = vmatmul.mubr.bf16.gmra.mrb[60].mxu0 %v2029_v30 }
  0xab   : > { %1151 = vmatmul.mubr.bf16.gmra.mrb[60].mxu1 %v2030_v31 }
 0x105   : > { %v1670_v32 = vpop.f32.mrb[0].mxu0 }
 0x106   : > { %v1782_v33 = vpop.f32.mrb[0].mxu1  ;;  %v1671_v34 = vpop.f32.mrb[1].mxu0 }
 0x107   : > { %v1672_v35 = vadd.f32 %v1671_v34, %v1670_v32  ;;  %v1783_v36 = vpop.f32.mrb[1].mxu1  ;;  %v1673_v37 = vpop.f32.mrb[2].mxu0 }
 0x108   : > { %v1784_v38 = vadd.f32 %v1783_v36, %v1782_v33  ;;  %v1785_v39 = vpop.f32.mrb[2].mxu1  ;;  %v1674_v40 = vpop.f32.mrb[3].mxu0 }
 0x109   : > { %v1675_v42 = vadd.f32 %v1674_v40, %v1673_v37  ;;  %v1786_v43 = vpop.f32.mrb[3].mxu1 }
 0x10a   : > { %v1033_v44 = vadd.f32 %v1784_v38, %v1672_v35  ;;  %v1787_v45 = vadd.f32 %v1786_v43, %v1785_v39 }
 0x10c   : > { %1258 = vst [vmem:[%s2553_s10] sm:$0xff] %v1033_v44  ;;  %v1322_v7 = vadd.f32 %v1290_v41, %v1033_v44  ;;  %v1036_v8 = vadd.f32 %v1787_v45, %v1675_v42 }
 0x10d   : > { %v1676_v12 = vpop.f32.mrb[4].mxu0 }
 0x10e   : > { %v1354_v16 = vmul.f32 0.33333334, %v1322_v7  ;;  %1259 = vst [vmem:[%s2553_s10 + $0x8] sm:$0xff] %v1036_v8  ;;  %v1323_v17 = vadd.f32 %v1291_v46, %v1036_v8  ;;  %v1788_v18 = vpop.f32.mrb[4].mxu1  ;;  %v1677_v19 = vpop.f32.mrb[5].mxu0 }
 0x10f   : > { %v1678_v20 = vadd.f32 %v1677_v19, %v1676_v12  ;;  %v1789_v21 = vpop.f32.mrb[5].mxu1  ;;  %v1679_v22 = vpop.f32.mrb[6].mxu0 }
 0x110   : > { %v1355_v23 = vmul.f32 0.33333334, %v1323_v17  ;;  %v1790_v24 = vadd.f32 %v1789_v21, %v1788_v18  ;;  %v1791_v25 = vpop.f32.mrb[6].mxu1  ;;  %v1680_v26 = vpop.f32.mrb[7].mxu0  ;;  %1386 = vst [vmem:[%s2570_s12] sm:$0xff] %v1354_v16 }
 0x111   : > { %v1681_v27 = vadd.f32 %v1680_v26, %v1679_v22  ;;  %v1792_v28 = vpop.f32.mrb[7].mxu1 }
 0x112   : > { %v1041_v29 = vadd.f32 %v1790_v24, %v1678_v20  ;;  %v1793_v30 = vadd.f32 %v1792_v28, %v1791_v25  ;;  %1387 = vst [vmem:[%s2570_s12 + $0x8] sm:$0xff] %v1355_v23 }
 0x114   : > { %1260 = vst [vmem:[%s2553_s10 + $0x10] sm:$0xff] %v1041_v29  ;;  %v1324_v31 = vadd.f32 %v1292_v47, %v1041_v29  ;;  %v1044_v32 = vadd.f32 %v1793_v30, %v1681_v27 }
 0x115   : > { %v1682_v33 = vpop.f32.mrb[8].mxu0 }
 0x116   : > { %v1356_v34 = vmul.f32 0.33333334, %v1324_v31  ;;  %1261 = vst [vmem:[%s2553_s10 + $0x18] sm:$0xff] %v1044_v32  ;;  %v1325_v35 = vadd.f32 %v1293_v48, %v1044_v32  ;;  %v1794_v36 = vpop.f32.mrb[8].mxu1  ;;  %v1683_v37 = vpop.f32.mrb[9].mxu0 }
 0x117   : > { %v1684_v38 = vadd.f32 %v1683_v37, %v1682_v33  ;;  %v1795_v39 = vpop.f32.mrb[9].mxu1  ;;  %v1685_v40 = vpop.f32.mrb[10].mxu0 }
 0x118   : > { %v1357_v41 = vmul.f32 0.33333334, %v1325_v35  ;;  %v1796_v42 = vadd.f32 %v1795_v39, %v1794_v36  ;;  %v1797_v43 = vpop.f32.mrb[10].mxu1  ;;  %v1686_v44 = vpop.f32.mrb[11].mxu0  ;;  %1388 = vst [vmem:[%s2570_s12 + $0x10] sm:$0xff] %v1356_v34 }
 0x119   : > { %v1687_v45 = vadd.f32 %v1686_v44, %v1685_v40  ;;  %v1798_v46 = vpop.f32.mrb[11].mxu1 }
 0x11a   : > { %v1049_v47 = vadd.f32 %v1796_v42, %v1684_v38  ;;  %v1799_v7 = vadd.f32 %v1798_v46, %v1797_v43  ;;  %1389 = vst [vmem:[%s2570_s12 + $0x18] sm:$0xff] %v1357_v41 }
 0x11c   : > { %1262 = vst [vmem:[%s2553_s10 + $0x20] sm:$0xff] %v1049_v47  ;;  %v1326_v48 = vadd.f32 %v2487_v49, %v1049_v47  ;;  %v1052_v8 = vadd.f32 %v1799_v7, %v1687_v45 }
 0x11d   : > { %v1688_v12 = vpop.f32.mrb[12].mxu0 }
 0x11e   : > { %v1358_v16 = vmul.f32 0.33333334, %v1326_v48  ;;  %1263 = vst [vmem:[%s2553_s10 + $0x28] sm:$0xff] %v1052_v8  ;;  %v1327_v17 = vadd.f32 %v2490_v50, %v1052_v8  ;;  %v1800_v18 = vpop.f32.mrb[12].mxu1  ;;  %v1689_v19 = vpop.f32.mrb[13].mxu0 }
 0x11f   : > { %v1690_v20 = vadd.f32 %v1689_v19, %v1688_v12  ;;  %v1801_v21 = vpop.f32.mrb[13].mxu1  ;;  %v1691_v22 = vpop.f32.mrb[14].mxu0 }
 0x120   : > { %v1359_v23 = vmul.f32 0.33333334, %v1327_v17  ;;  %v1802_v24 = vadd.f32 %v1801_v21, %v1800_v18  ;;  %v1803_v25 = vpop.f32.mrb[14].mxu1  ;;  %v1692_v26 = vpop.f32.mrb[15].mxu0  ;;  %1390 = vst [vmem:[%s2570_s12 + $0x20] sm:$0xff] %v1358_v16 }
 0x121   : > { %v1693_v49 = vadd.f32 %v1692_v26, %v1691_v22  ;;  %v1804_v27 = vpop.f32.mrb[15].mxu1 }
 0x122   : > { %v1057_v28 = vadd.f32 %v1802_v24, %v1690_v20  ;;  %v1805_v29 = vadd.f32 %v1804_v27, %v1803_v25  ;;  %1391 = vst [vmem:[%s2570_s12 + $0x28] sm:$0xff] %v1359_v23 }
 0x124   : > { %1264 = vst [vmem:[%s2553_s10 + $0x30] sm:$0xff] %v1057_v28  ;;  %v1328_v50 = vadd.f32 %v2493_v51, %v1057_v28  ;;  %v1060_v30 = vadd.f32 %v1805_v29, %v1693_v49 }
 0x125   : > { %v1694_v31 = vpop.f32.mrb[16].mxu0 }
 0x126   : > { %v1360_v32 = vmul.f32 0.33333334, %v1328_v50  ;;  %1265 = vst [vmem:[%s2553_s10 + $0x38] sm:$0xff] %v1060_v30  ;;  %v1329_v33 = vadd.f32 %v2496_v52, %v1060_v30  ;;  %v1806_v34 = vpop.f32.mrb[16].mxu1  ;;  %v1695_v35 = vpop.f32.mrb[17].mxu0 }
 0x127   : > { %v1696_v36 = vadd.f32 %v1695_v35, %v1694_v31  ;;  %v1807_v37 = vpop.f32.mrb[17].mxu1  ;;  %v1697_v38 = vpop.f32.mrb[18].mxu0 }
 0x128   : > { %v1361_v39 = vmul.f32 0.33333334, %v1329_v33  ;;  %v1808_v40 = vadd.f32 %v1807_v37, %v1806_v34  ;;  %v1809_v41 = vpop.f32.mrb[18].mxu1  ;;  %v1698_v42 = vpop.f32.mrb[19].mxu0  ;;  %1392 = vst [vmem:[%s2570_s12 + $0x30] sm:$0xff] %v1360_v32 }
 0x129   : > { %v1699_v51 = vadd.f32 %v1698_v42, %v1697_v38  ;;  %v1810_v43 = vpop.f32.mrb[19].mxu1 }
 0x12a   : > { %v1065_v44 = vadd.f32 %v1808_v40, %v1696_v36  ;;  %v1811_v45 = vadd.f32 %v1810_v43, %v1809_v41  ;;  %1393 = vst [vmem:[%s2570_s12 + $0x38] sm:$0xff] %v1361_v39 }
 0x12c   : > { %1266 = vst [vmem:[%s2553_s10 + $0x40] sm:$0xff] %v1065_v44  ;;  %v1330_v52 = vadd.f32 %v2499_v53, %v1065_v44  ;;  %v1068_v46 = vadd.f32 %v1811_v45, %v1699_v51 }
 0x12d   : > { %v1700_v47 = vpop.f32.mrb[20].mxu0 }
 0x12e   : > { %v1362_v7 = vmul.f32 0.33333334, %v1330_v52  ;;  %1267 = vst [vmem:[%s2553_s10 + $0x48] sm:$0xff] %v1068_v46  ;;  %v1331_v48 = vadd.f32 %v2502_v54, %v1068_v46  ;;  %v1812_v8 = vpop.f32.mrb[20].mxu1  ;;  %v1701_v12 = vpop.f32.mrb[21].mxu0 }
 0x12f   : > { %v1702_v16 = vadd.f32 %v1701_v12, %v1700_v47  ;;  %v1813_v17 = vpop.f32.mrb[21].mxu1  ;;  %v1703_v18 = vpop.f32.mrb[22].mxu0 }
 0x130   : > { %v1363_v19 = vmul.f32 0.33333334, %v1331_v48  ;;  %v1814_v20 = vadd.f32 %v1813_v17, %v1812_v8  ;;  %v1815_v21 = vpop.f32.mrb[22].mxu1  ;;  %v1704_v22 = vpop.f32.mrb[23].mxu0  ;;  %1394 = vst [vmem:[%s2570_s12 + $0x40] sm:$0xff] %v1362_v7 }
 0x131   : > { %v1705_v53 = vadd.f32 %v1704_v22, %v1703_v18  ;;  %v1816_v23 = vpop.f32.mrb[23].mxu1 }
 0x132   : > { %v1073_v24 = vadd.f32 %v1814_v20, %v1702_v16  ;;  %v1817_v25 = vadd.f32 %v1816_v23, %v1815_v21  ;;  %1395 = vst [vmem:[%s2570_s12 + $0x48] sm:$0xff] %v1363_v19 }
 0x134   : > { %1268 = vst [vmem:[%s2553_s10 + $0x50] sm:$0xff] %v1073_v24  ;;  %v1332_v54 = vadd.f32 %v2505_v55, %v1073_v24  ;;  %v1076_v26 = vadd.f32 %v1817_v25, %v1705_v53 }
 0x135   : > { %v1706_v49 = vpop.f32.mrb[24].mxu0 }
 0x136   : > { %v1364_v27 = vmul.f32 0.33333334, %v1332_v54  ;;  %1269 = vst [vmem:[%s2553_s10 + $0x58] sm:$0xff] %v1076_v26  ;;  %v1333_v28 = vadd.f32 %v2508_v56, %v1076_v26  ;;  %v1818_v29 = vpop.f32.mrb[24].mxu1  ;;  %v1707_v50 = vpop.f32.mrb[25].mxu0 }
 0x137   : > { %v1708_v30 = vadd.f32 %v1707_v50, %v1706_v49  ;;  %v1819_v31 = vpop.f32.mrb[25].mxu1  ;;  %v1709_v32 = vpop.f32.mrb[26].mxu0 }
 0x138   : > { %v1365_v33 = vmul.f32 0.33333334, %v1333_v28  ;;  %v1820_v34 = vadd.f32 %v1819_v31, %v1818_v29  ;;  %v1821_v35 = vpop.f32.mrb[26].mxu1  ;;  %v1710_v36 = vpop.f32.mrb[27].mxu0  ;;  %1396 = vst [vmem:[%s2570_s12 + $0x50] sm:$0xff] %v1364_v27 }
 0x139   : > { %v1711_v55 = vadd.f32 %v1710_v36, %v1709_v32  ;;  %v1822_v37 = vpop.f32.mrb[27].mxu1 }
 0x13a   : > { %v1081_v38 = vadd.f32 %v1820_v34, %v1708_v30  ;;  %v1823_v39 = vadd.f32 %v1822_v37, %v1821_v35  ;;  %1397 = vst [vmem:[%s2570_s12 + $0x58] sm:$0xff] %v1365_v33 }
 0x13c   : > { %1270 = vst [vmem:[%s2553_s10 + $0x60] sm:$0xff] %v1081_v38  ;;  %v1334_v56 = vadd.f32 %v2511_v57, %v1081_v38  ;;  %v1084_v40 = vadd.f32 %v1823_v39, %v1711_v55 }
 0x13d   : > { %v1712_v41 = vpop.f32.mrb[28].mxu0 }
 0x13e   : > { %v1366_v42 = vmul.f32 0.33333334, %v1334_v56  ;;  %1271 = vst [vmem:[%s2553_s10 + $0x68] sm:$0xff] %v1084_v40  ;;  %v1335_v51 = vadd.f32 %v2514_v58, %v1084_v40  ;;  %v1824_v43 = vpop.f32.mrb[28].mxu1  ;;  %v1713_v44 = vpop.f32.mrb[29].mxu0 }
 0x13f   : > { %v1714_v45 = vadd.f32 %v1713_v44, %v1712_v41  ;;  %v1825_v52 = vpop.f32.mrb[29].mxu1  ;;  %v1715_v46 = vpop.f32.mrb[30].mxu0 }
 0x140   : > { %v1367_v47 = vmul.f32 0.33333334, %v1335_v51  ;;  %v1826_v7 = vadd.f32 %v1825_v52, %v1824_v43  ;;  %v1827_v48 = vpop.f32.mrb[30].mxu1  ;;  %v1716_v8 = vpop.f32.mrb[31].mxu0  ;;  %1398 = vst [vmem:[%s2570_s12 + $0x60] sm:$0xff] %v1366_v42 }
 0x141   : > { %v1717_v57 = vadd.f32 %v1716_v8, %v1715_v46  ;;  %v1828_v12 = vpop.f32.mrb[31].mxu1 }
 0x142   : > { %v1089_v16 = vadd.f32 %v1826_v7, %v1714_v45  ;;  %v1829_v17 = vadd.f32 %v1828_v12, %v1827_v48  ;;  %1399 = vst [vmem:[%s2570_s12 + $0x68] sm:$0xff] %v1367_v47 }
 0x144   : > { %1272 = vst [vmem:[%s2553_s10 + $0x70] sm:$0xff] %v1089_v16  ;;  %v1336_v58 = vadd.f32 %v2517_v59, %v1089_v16  ;;  %v1092_v18 = vadd.f32 %v1829_v17, %v1717_v57 }
 0x145   : > { %v1718_v19 = vpop.f32.mrb[32].mxu0 }
 0x146   : > { %v1368_v20 = vmul.f32 0.33333334, %v1336_v58  ;;  %1273 = vst [vmem:[%s2553_s10 + $0x78] sm:$0xff] %v1092_v18  ;;  %v1337_v21 = vadd.f32 %v2520_v60, %v1092_v18  ;;  %v1830_v22 = vpop.f32.mrb[32].mxu1  ;;  %v1719_v53 = vpop.f32.mrb[33].mxu0 }
 0x147   : > { %v1720_v23 = vadd.f32 %v1719_v53, %v1718_v19  ;;  %v1831_v24 = vpop.f32.mrb[33].mxu1  ;;  %v1721_v25 = vpop.f32.mrb[34].mxu0 }
 0x148   : > { %v1369_v54 = vmul.f32 0.33333334, %v1337_v21  ;;  %v1832_v26 = vadd.f32 %v1831_v24, %v1830_v22  ;;  %v1833_v49 = vpop.f32.mrb[34].mxu1  ;;  %v1722_v27 = vpop.f32.mrb[35].mxu0  ;;  %1400 = vst [vmem:[%s2570_s12 + $0x70] sm:$0xff] %v1368_v20 }
 0x149   : > { %v1723_v59 = vadd.f32 %v1722_v27, %v1721_v25  ;;  %v1834_v28 = vpop.f32.mrb[35].mxu1 }
 0x14a   : > { %v1097_v29 = vadd.f32 %v1832_v26, %v1720_v23  ;;  %v1835_v50 = vadd.f32 %v1834_v28, %v1833_v49  ;;  %1401 = vst [vmem:[%s2570_s12 + $0x78] sm:$0xff] %v1369_v54 }
 0x14c   : > { %1274 = vst [vmem:[%s2553_s10 + $0x80] sm:$0xff] %v1097_v29  ;;  %v1338_v60 = vadd.f32 %v2523_v61, %v1097_v29  ;;  %v1100_v30 = vadd.f32 %v1835_v50, %v1723_v59 }
 0x14d   : > { %v1724_v31 = vpop.f32.mrb[36].mxu0 }
 0x14e   : > { %v1370_v32 = vmul.f32 0.33333334, %v1338_v60  ;;  %1275 = vst [vmem:[%s2553_s10 + $0x88] sm:$0xff] %v1100_v30  ;;  %v1339_v33 = vadd.f32 %v2526_v62, %v1100_v30  ;;  %v1836_v34 = vpop.f32.mrb[36].mxu1  ;;  %v1725_v35 = vpop.f32.mrb[37].mxu0 }
 0x14f   : > { %v1726_v36 = vadd.f32 %v1725_v35, %v1724_v31  ;;  %v1837_v55 = vpop.f32.mrb[37].mxu1  ;;  %v1727_v37 = vpop.f32.mrb[38].mxu0 }
 0x150   : > { %v1371_v38 = vmul.f32 0.33333334, %v1339_v33  ;;  %v1838_v39 = vadd.f32 %v1837_v55, %v1836_v34  ;;  %v1839_v56 = vpop.f32.mrb[38].mxu1  ;;  %v1728_v40 = vpop.f32.mrb[39].mxu0  ;;  %1402 = vst [vmem:[%s2570_s12 + $0x80] sm:$0xff] %v1370_v32 }
 0x151   : > { %v1729_v61 = vadd.f32 %v1728_v40, %v1727_v37  ;;  %v1840_v41 = vpop.f32.mrb[39].mxu1 }
 0x152   : > { %v1105_v42 = vadd.f32 %v1838_v39, %v1726_v36  ;;  %v1841_v51 = vadd.f32 %v1840_v41, %v1839_v56  ;;  %1403 = vst [vmem:[%s2570_s12 + $0x88] sm:$0xff] %v1371_v38 }
 0x154   : > { %1276 = vst [vmem:[%s2553_s10 + $0x90] sm:$0xff] %v1105_v42  ;;  %v1340_v62 = vadd.f32 %v2529_v63, %v1105_v42  ;;  %v1108_v43 = vadd.f32 %v1841_v51, %v1729_v61 }
 0x155   : > { %v1730_v44 = vpop.f32.mrb[40].mxu0 }
 0x156   : > { %v1372_v45 = vmul.f32 0.33333334, %v1340_v62  ;;  %1277 = vst [vmem:[%s2553_s10 + $0x98] sm:$0xff] %v1108_v43  ;;  %v1341_v52 = vadd.f32 %v2532_v0, %v1108_v43  ;;  %v1842_v46 = vpop.f32.mrb[40].mxu1  ;;  %v1731_v47 = vpop.f32.mrb[41].mxu0 }
 0x157   : > { %v1732_v7 = vadd.f32 %v1731_v47, %v1730_v44  ;;  %v1843_v48 = vpop.f32.mrb[41].mxu1  ;;  %v1733_v8 = vpop.f32.mrb[42].mxu0 }
 0x158   : > { %v1373_v57 = vmul.f32 0.33333334, %v1341_v52  ;;  %v1844_v12 = vadd.f32 %v1843_v48, %v1842_v46  ;;  %v1845_v16 = vpop.f32.mrb[42].mxu1  ;;  %v1734_v17 = vpop.f32.mrb[43].mxu0  ;;  %1404 = vst [vmem:[%s2570_s12 + $0x90] sm:$0xff] %v1372_v45 }
 0x159   : > { %v1735_v63 = vadd.f32 %v1734_v17, %v1733_v8  ;;  %v1846_v58 = vpop.f32.mrb[43].mxu1 }
 0x15a   : > { %v1113_v18 = vadd.f32 %v1844_v12, %v1732_v7  ;;  %v1847_v19 = vadd.f32 %v1846_v58, %v1845_v16  ;;  %1405 = vst [vmem:[%s2570_s12 + $0x98] sm:$0xff] %v1373_v57 }
 0x15c   : > { %1278 = vst [vmem:[%s2553_s10 + $0xa0] sm:$0xff] %v1113_v18  ;;  %v1342_v0 = vadd.f32 %v2535_v1, %v1113_v18  ;;  %v1116_v20 = vadd.f32 %v1847_v19, %v1735_v63 }
 0x15d   : > { %v1736_v21 = vpop.f32.mrb[44].mxu0 }
 0x15e   : > { %v1374_v22 = vmul.f32 0.33333334, %v1342_v0  ;;  %1279 = vst [vmem:[%s2553_s10 + $0xa8] sm:$0xff] %v1116_v20  ;;  %v1343_v53 = vadd.f32 %v2538_v2, %v1116_v20  ;;  %v1848_v23 = vpop.f32.mrb[44].mxu1  ;;  %v1737_v24 = vpop.f32.mrb[45].mxu0 }
 0x15f   : > { %v1738_v25 = vadd.f32 %v1737_v24, %v1736_v21  ;;  %v1849_v54 = vpop.f32.mrb[45].mxu1  ;;  %v1739_v26 = vpop.f32.mrb[46].mxu0 }
 0x160   : > { %v1375_v49 = vmul.f32 0.33333334, %v1343_v53  ;;  %v1850_v27 = vadd.f32 %v1849_v54, %v1848_v23  ;;  %v1851_v59 = vpop.f32.mrb[46].mxu1  ;;  %v1740_v28 = vpop.f32.mrb[47].mxu0  ;;  %1406 = vst [vmem:[%s2570_s12 + $0xa0] sm:$0xff] %v1374_v22 }
 0x161   : > { %v1741_v1 = vadd.f32 %v1740_v28, %v1739_v26  ;;  %v1852_v29 = vpop.f32.mrb[47].mxu1 }
 0x162   : > { %v1121_v50 = vadd.f32 %v1850_v27, %v1738_v25  ;;  %v1853_v60 = vadd.f32 %v1852_v29, %v1851_v59  ;;  %1407 = vst [vmem:[%s2570_s12 + $0xa8] sm:$0xff] %v1375_v49 }
 0x164   : > { %1280 = vst [vmem:[%s2553_s10 + $0xb0] sm:$0xff] %v1121_v50  ;;  %v1344_v2 = vadd.f32 %v2541_v3, %v1121_v50  ;;  %v1124_v30 = vadd.f32 %v1853_v60, %v1741_v1 }
 0x165   : > { %v1742_v31 = vpop.f32.mrb[48].mxu0 }
 0x166   : > { %v1376_v32 = vmul.f32 0.33333334, %v1344_v2  ;;  %1281 = vst [vmem:[%s2553_s10 + $0xb8] sm:$0xff] %v1124_v30  ;;  %v1345_v33 = vadd.f32 %v2544_v4, %v1124_v30  ;;  %v1854_v34 = vpop.f32.mrb[48].mxu1  ;;  %v1743_v35 = vpop.f32.mrb[49].mxu0 }
 0x167   : > { %v1744_v36 = vadd.f32 %v1743_v35, %v1742_v31  ;;  %v1855_v55 = vpop.f32.mrb[49].mxu1  ;;  %v1745_v37 = vpop.f32.mrb[50].mxu0 }
 0x168   : > { %v1377_v38 = vmul.f32 0.33333334, %v1345_v33  ;;  %v1856_v39 = vadd.f32 %v1855_v55, %v1854_v34  ;;  %v1857_v56 = vpop.f32.mrb[50].mxu1  ;;  %v1746_v40 = vpop.f32.mrb[51].mxu0  ;;  %1408 = vst [vmem:[%s2570_s12 + $0xb0] sm:$0xff] %v1376_v32 }
 0x169   : > { %v1747_v3 = vadd.f32 %v1746_v40, %v1745_v37  ;;  %v1858_v61 = vpop.f32.mrb[51].mxu1 }
 0x16a   : > { %v1129_v41 = vadd.f32 %v1856_v39, %v1744_v36  ;;  %v1859_v42 = vadd.f32 %v1858_v61, %v1857_v56  ;;  %1409 = vst [vmem:[%s2570_s12 + $0xb8] sm:$0xff] %v1377_v38 }
 0x16c   : > { %1282 = vst [vmem:[%s2553_s10 + $0xc0] sm:$0xff] %v1129_v41  ;;  %v1346_v4 = vadd.f32 %v2547_v5, %v1129_v41  ;;  %v1132_v51 = vadd.f32 %v1859_v42, %v1747_v3 }
 0x16d   : > { %v1748_v62 = vpop.f32.mrb[52].mxu0 }
 0x16e   : > { %v1378_v43 = vmul.f32 0.33333334, %v1346_v4  ;;  %1283 = vst [vmem:[%s2553_s10 + $0xc8] sm:$0xff] %v1132_v51  ;;  %v1347_v44 = vadd.f32 %v2550_v6, %v1132_v51  ;;  %v1860_v45 = vpop.f32.mrb[52].mxu1  ;;  %v1749_v52 = vpop.f32.mrb[53].mxu0 }
 0x16f   : > { %v1750_v46 = vadd.f32 %v1749_v52, %v1748_v62  ;;  %v1861_v47 = vpop.f32.mrb[53].mxu1  ;;  %v1751_v7 = vpop.f32.mrb[54].mxu0 }
 0x170   : > { %v1379_v48 = vmul.f32 0.33333334, %v1347_v44  ;;  %v1862_v8 = vadd.f32 %v1861_v47, %v1860_v45  ;;  %v1863_v57 = vpop.f32.mrb[54].mxu1  ;;  %v1752_v12 = vpop.f32.mrb[55].mxu0  ;;  %1410 = vst [vmem:[%s2570_s12 + $0xc0] sm:$0xff] %v1378_v43 }
 0x171   : > { %v1753_v5 = vadd.f32 %v1752_v12, %v1751_v7  ;;  %v1864_v16 = vpop.f32.mrb[55].mxu1 }
 0x172   : > { %v1137_v17 = vadd.f32 %v1862_v8, %v1750_v46  ;;  %v1865_v63 = vadd.f32 %v1864_v16, %v1863_v57  ;;  %1411 = vst [vmem:[%s2570_s12 + $0xc8] sm:$0xff] %v1379_v48 }
 0x174   : > { %1284 = vst [vmem:[%s2553_s10 + $0xd0] sm:$0xff] %v1137_v17  ;;  %v1348_v6 = vadd.f32 %v2557_v9, %v1137_v17  ;;  %v1140_v58 = vadd.f32 %v1865_v63, %v1753_v5 }
 0x175   : > { %v1754_v18 = vpop.f32.mrb[56].mxu0 }
 0x176   : > { %v1380_v19 = vmul.f32 0.33333334, %v1348_v6  ;;  %1285 = vst [vmem:[%s2553_s10 + $0xd8] sm:$0xff] %v1140_v58  ;;  %v1349_v0 = vadd.f32 %v2560_v10, %v1140_v58  ;;  %v1866_v20 = vpop.f32.mrb[56].mxu1  ;;  %v1755_v21 = vpop.f32.mrb[57].mxu0 }
 0x177   : > { %v1756_v22 = vadd.f32 %v1755_v21, %v1754_v18  ;;  %v1867_v53 = vpop.f32.mrb[57].mxu1  ;;  %v1757_v23 = vpop.f32.mrb[58].mxu0 }
 0x178   : > { %v1381_v24 = vmul.f32 0.33333334, %v1349_v0  ;;  %v1868_v25 = vadd.f32 %v1867_v53, %v1866_v20  ;;  %v1869_v54 = vpop.f32.mrb[58].mxu1  ;;  %v1758_v26 = vpop.f32.mrb[59].mxu0  ;;  %1412 = vst [vmem:[%s2570_s12 + $0xd0] sm:$0xff] %v1380_v19 }
 0x179   : > { %v1759_v9 = vadd.f32 %v1758_v26, %v1757_v23  ;;  %v1870_v49 = vpop.f32.mrb[59].mxu1 }
 0x17a   : > { %v1145_v27 = vadd.f32 %v1868_v25, %v1756_v22  ;;  %v1871_v59 = vadd.f32 %v1870_v49, %v1869_v54  ;;  %1413 = vst [vmem:[%s2570_s12 + $0xd8] sm:$0xff] %v1381_v24 }
 0x17c   : > { %1286 = vst [vmem:[%s2553_s10 + $0xe0] sm:$0xff] %v1145_v27  ;;  %v1350_v10 = vadd.f32 %v2563_v11, %v1145_v27  ;;  %v1148_v28 = vadd.f32 %v1871_v59, %v1759_v9 }
 0x17d   : > { %v1760_v1 = vpop.f32.mrb[60].mxu0 }
 0x17e   : > { %v1382_v29 = vmul.f32 0.33333334, %v1350_v10  ;;  %1287 = vst [vmem:[%s2553_s10 + $0xe8] sm:$0xff] %v1148_v28  ;;  %v1351_v50 = vadd.f32 %v2573_v13, %v1148_v28  ;;  %v1872_v60 = vpop.f32.mrb[60].mxu1  ;;  %v1761_v2 = vpop.f32.mrb[61].mxu0 }
 0x17f   : > { %v1762_v30 = vadd.f32 %v1761_v2, %v1760_v1  ;;  %v1873_v31 = vpop.f32.mrb[61].mxu1  ;;  %v1763_v32 = vpop.f32.mrb[62].mxu0 }
 0x180   : > { %v1383_v33 = vmul.f32 0.33333334, %v1351_v50  ;;  %v1874_v34 = vadd.f32 %v1873_v31, %v1872_v60  ;;  %v1875_v35 = vpop.f32.mrb[62].mxu1  ;;  %v1764_v11 = vpop.f32.mrb[63].mxu0  ;;  %1414 = vst [vmem:[%s2570_s12 + $0xe0] sm:$0xff] %v1382_v29 }
 0x181   : > { %v1765_v36 = vadd.f32 %v1764_v11, %v1763_v32  ;;  %v1876_v55 = vpop.f32.mrb[63].mxu1 }
 0x182   : > { %v1153_v13 = vadd.f32 %v1874_v34, %v1762_v30  ;;  %v1877_v37 = vadd.f32 %v1876_v55, %v1875_v35  ;;  %1415 = vst [vmem:[%s2570_s12 + $0xe8] sm:$0xff] %v1383_v33 }
 0x184   : > { %1288 = vst [vmem:[%s2553_s10 + $0xf0] sm:$0xff] %v1153_v13  ;;  %v1352_v38 = vadd.f32 %v2576_v14, %v1153_v13  ;;  %v1156_v39 = vadd.f32 %v1877_v37, %v1765_v36 }
 0x186   : > { %v1384_v56 = vmul.f32 0.33333334, %v1352_v38  ;;  %1289 = vst [vmem:[%s2553_s10 + $0xf8] sm:$0xff] %v1156_v39  ;;  %v1353_v40 = vadd.f32 %v2579_v15, %v1156_v39 }
 0x187   : > { %2044 = shalt.err (!%p2041_p5)
}
 0x188   : > { %s2045_s29 = scalar_lea.hbm %s2671_s22, 4096  ;;  %s2049_s10 = scalar_lea.hbm %s2732_s3, 8192 }
 0x189   : > { %p2046_p6 = scmp.ne.s32.totalorder %s2671_s22, %s2045_s29  ;;  %p2050_p10 = scmp.lt.u32.totalorder %s2671_s22, %s2732_s3 }
 0x18a   : > { %p2051_p11 = scmp.lt.u32.totalorder %s2049_s10, %s2045_s29  ;;  %p2053_p13 = scmp.lt.u32.totalorder %s2045_s29, %s2671_s22 }
 0x18b   : > { %p2047_p7 = pnand %p2046_p6, %p2179_p4 }
 0x18c   : > { %p2052_p12 = por %p2051_p11, %p2050_p10 }
 0x18d   : > { %p2048_p9 = pneg %p2047_p7 }
 0x18e   : > { %p2054_p0 = por %p2053_p13, %p2052_p12 }
 0x190   : > { %p2055_p1 = pnand %p2054_p0, %p2048_p9 }
 0x192   : > { %2058 = shalt.err (!%p2055_p1)
}
 0x193   : > { %s2112_s7 = smov 128   ;;  %s2113_s14 = smov 8   ;;  %v1385_v14 = vmul.f32 0.33333334, %v1353_v40  ;;  %1416 = vst [vmem:[%s2570_s12 + $0xf0] sm:$0xff] %v1384_v56 }
 0x194   : > { %1878 = dma.vmem_to_hbm [thread:$0]  (%p2179_p4), %s2673_s13, 4096, %s2671_s22, %s2681_s18, %s2112_s7, %s2112_s7, %s2113_s14  }
 0x195   : > { %1417 = vst [vmem:[%s2570_s12 + $0xf8] sm:$0xff] %v1385_v14 }
 0x196 PF: > { %p1884_p2 = scmp.ge.s32.totalorder %s2109_s20, 2  ;;  %s1456_s21 = sand.u32 1, %s2089_s15  }
 0x197   : > { %s1457_s24 = scalar_lea.sflag [#allocation4], %s1456_s21 }
 0x198   : > { %p1881_p3 = pnand %p1884_p2, %p2186_p8 }
 0x19a   : > { %2084 = dma.done.wait (!%p1881_p3), %s1457_s24, 4096  }
 0x19b   : > { %2086 = vsyncadd (!%p1881_p3), %s1457_s24, 4294963200  ;;  %s18_s20 = sadd.s32 1, %s2109_s20   ;;  %s2737_s15 = smov %s2093_s16 }
 0x19c   : > { %p15_p5 = scmp.ge.s32.totalorder %s18_s20, 4   ;;  %s2738_s16 = smov %s2097_s17 }
 0x19d   : > { %s2739_s17 = smov %s2192_s28  ;;  %s2740_s18 = smov %s2105_s19 }
 0x19e   : > { %s2741_s19 = smov %s2743_s23  ;;  %17 = sbr.rel (!%p15_p5) target bundleno = 4 (0x4), region = 93 }
 0x1a5   :  { %1470 = vsyncpa [#allocation4], 1 }
 0x1a6   :  { %1472 = vsyncpa [#allocation4 + $0x1], 1 }

</bundles_post_ra>
